<compile_context>
chip_gen: v6e
topology: v6e:2x2x1
jax: 0.10.0
libtpu: 0.0.40
codegen_flags: <defaults>
</compile_context>

<pallas_src>
import functools
import numpy as np

import jax
import jax.numpy as jnp
from jax.experimental import pallas as pl
from jax.experimental.pallas import tpu as pltpu


# --------------------------------------------------------------------------
# Kernel: grid = (batch, q_tile).  K/V are built once per batch (q_tile == 0)
# into VMEM scratch; every q_tile does Q-proj, per-head scores, head mix,
# softmax, attention@V and the output projection for its Tq rows.
# --------------------------------------------------------------------------
def famha_kernel(q_ref, x_ref,
                 srw_ref, srb_ref, lng_ref, lnb_ref,
                 wq_ref, bq_ref, wk_ref, bk_ref, wv_ref, bv_ref,
                 wt_ref,                      # (h, h) in SMEM: wt / sqrt(d_k)
                 wo_ref, bo_ref,
                 out_ref,
                 k_scr, v_scr,                # (nk, h*d_k) / (nk, h*d_v) bf16
                 *, h, d_k, d_v):
    f32 = jnp.float32
    bf16 = jnp.bfloat16
    qi = pl.program_id(1)

    # --- once per batch: sr_conv (per-channel scale/bias) + LayerNorm + K/V ---
    @pl.when(qi == 0)
    def _build_kv():
        x = x_ref[...] * srw_ref[...] + srb_ref[...]            # (nk, dm) f32
        mean = jnp.mean(x, axis=-1, keepdims=True)
        xc = x - mean
        var = jnp.mean(xc * xc, axis=-1, keepdims=True)
        x = xc * jax.lax.rsqrt(var + 1e-5) * lng_ref[...] + lnb_ref[...]
        x_bf = x.astype(bf16)
        k = jnp.dot(x_bf, wk_ref[...], preferred_element_type=f32) + bk_ref[...]
        k_scr[...] = k.astype(bf16)                              # (nk, h*d_k)
        v = jnp.dot(x_bf, wv_ref[...], preferred_element_type=f32) + bv_ref[...]
        v_scr[...] = v.astype(bf16)                              # (nk, h*d_v)

    # --- Q projection for this q-tile (bf16 in, f32 accumulate) ---
    q = jnp.dot(q_ref[...], wq_ref[...], preferred_element_type=f32) + bq_ref[...]
    q_bf = q.astype(bf16)                                        # (Tq, h*d_k)

    # --- per-input-head raw logits: contraction depth d_k (un-folded mix) ---
    nt = (((1,), (1,)), ((), ()))                                # A @ B^T
    att = [jax.lax.dot_general(q_bf[:, i * d_k:(i + 1) * d_k],
                               k_scr[:, i * d_k:(i + 1) * d_k],
                               nt, preferred_element_type=f32)
           for i in range(h)]                                    # h x (Tq, nk) f32

    # --- per-output-head: (h,h) mix (scale folded), softmax, @V, out-proj ---
    acc = None
    for o in range(h):
        mixed = att[0] * wt_ref[o, 0]
        for i in range(1, h):
            mixed = mixed + att[i] * wt_ref[o, i]
        # transform-conv bias bt is constant along the key axis -> cancels in softmax
        mx = jnp.max(mixed, axis=-1, keepdims=True)
        e = jnp.exp(mixed - mx)
        p = (e * pl.reciprocal(jnp.sum(e, axis=-1, keepdims=True),
                               approx=True)).astype(bf16)        # (Tq, nk)
        outh = jnp.dot(p, v_scr[:, o * d_v:(o + 1) * d_v],
                       preferred_element_type=f32)               # (Tq, d_v)
        proj = jnp.dot(outh.astype(bf16), wo_ref[o * d_v:(o + 1) * d_v, :],
                       preferred_element_type=f32)               # (Tq, d_model)
        acc = proj if acc is None else acc + proj

    out_ref[...] = acc + bo_ref[...]


def _pick_tq(nq, target):
    """Largest q-tile <= target that divides nq and is a multiple of 8."""
    if nq <= target:
        return nq
    t = (min(target, nq) // 8) * 8
    while t >= 8:
        if nq % t == 0:
            return t
        t -= 8
    return nq


# --------------------------------------------------------------------------
# Wrapper: layout glue, weight casting, pallas_call
# --------------------------------------------------------------------------
def famha_pallas(queries, params, *, H, W, h, d_k, d_v, ratio, max_tq=256):
    # keys/values args of the PyTorch forward are unused when ratio > 1; the
    # K/V path is derived from `queries` via the spatial-reduction branch.
    b_s, nq, d_model = queries.shape
    assert nq == H * W
    Hs = (H - 1) // ratio + 1
    Ws = (W - 1) // ratio + 1
    nk = Hs * Ws

    # strided subsample of the depthwise stride-`ratio` 1x1 conv (kept f32)
    x_img = queries.reshape(b_s, H, W, d_model)
    x_sub = x_img[:, ::ratio, ::ratio, :].reshape(b_s, nk, d_model)

    # big streaming operand goes in as bf16 (halves HBM->VMEM bytes)
    q_bf = queries.astype(jnp.bfloat16)

    # head-mix coefficients with 1/sqrt(d_k) folded in; read as SMEM scalars
    wt_s = (params["wt"] / np.sqrt(d_k)).astype(jnp.float32)     # (h, h)

    wq_b = params["wq"].astype(jnp.bfloat16)                     # (dm, h*dk)
    wk_b = params["wk"].astype(jnp.bfloat16)                     # (dm, h*dk)
    wv_b = params["wv"].astype(jnp.bfloat16)                     # (dm, h*dv)
    wo_b = params["wo"].astype(jnp.bfloat16)                     # (h*dv, dm)

    Tq = _pick_tq(nq, max_tq)
    n_qt = nq // Tq

    kern = functools.partial(famha_kernel, h=h, d_k=d_k, d_v=d_v)
    const2 = lambda r, c: pl.BlockSpec((r, c), lambda b, qi: (0, 0))

    out = pl.pallas_call(
        kern,
        out_shape=jax.ShapeDtypeStruct((b_s, nq, d_model), jnp.float32),
        grid=(b_s, n_qt),
        in_specs=[
            pl.BlockSpec((None, Tq, d_model), lambda b, qi: (b, qi, 0)),   # queries (bf16)
            pl.BlockSpec((None, nk, d_model), lambda b, qi: (b, 0, 0)),    # x_sub (f32)
            const2(1, d_model), const2(1, d_model),                        # sr_w, sr_b
            const2(1, d_model), const2(1, d_model),                        # ln_g, ln_b
            const2(d_model, h * d_k), const2(1, h * d_k),                  # wq, bq
            const2(d_model, h * d_k), const2(1, h * d_k),                  # wk, bk
            const2(d_model, h * d_v), const2(1, h * d_v),                  # wv, bv
            pl.BlockSpec(memory_space=pltpu.MemorySpace.SMEM),             # wt_s
            const2(h * d_v, d_model), const2(1, d_model),                  # wo, bo
        ],
        out_specs=pl.BlockSpec((None, Tq, d_model), lambda b, qi: (b, qi, 0)),
        scratch_shapes=[
            pltpu.VMEM((nk, h * d_k), jnp.bfloat16),   # K (per batch, reused over q-tiles)
            pltpu.VMEM((nk, h * d_v), jnp.bfloat16),   # V
        ],
        compiler_params=pltpu.CompilerParams(
            dimension_semantics=("parallel", "arbitrary"),
            vmem_limit_bytes=48 * 1024 * 1024),
    )(q_bf, x_sub,
      params["sr_w"], params["sr_b"], params["ln_g"], params["ln_b"],
      wq_b, params["bq"], wk_b, params["bk"], wv_b, params["bv"],
      wt_s, wo_b, params["bo"])
    return out


# --------------------------------------------------------------------------
# Pure-JAX reference (mirrors the PyTorch forward exactly, eval mode, f32)
# --------------------------------------------------------------------------
def famha_ref(queries, params, *, H, W, h, d_k, d_v, ratio):
    b_s, nq, d_model = queries.shape
    hp = "highest"
    q = (jnp.matmul(queries, params["wq"], precision=hp) + params["bq"][0]
         ).reshape(b_s, nq, h, d_k).transpose(0, 2, 1, 3)                # (b,h,nq,dk)

    x_img = queries.transpose(0, 2, 1).reshape(b_s, d_model, H, W)       # NCHW
    x_sub = x_img[:, :, ::ratio, ::ratio]
    x_sub = (x_sub * params["sr_w"][0][None, :, None, None]
             + params["sr_b"][0][None, :, None, None])                   # depthwise 1x1
    x = x_sub.reshape(b_s, d_model, -1).transpose(0, 2, 1)               # (b,nk,c)
    mean = x.mean(-1, keepdims=True)
    var = ((x - mean) ** 2).mean(-1, keepdims=True)
    x = (x - mean) / jnp.sqrt(var + 1e-5) * params["ln_g"][0] + params["ln_b"][0]

    k = (jnp.matmul(x, params["wk"], precision=hp) + params["bk"][0]
         ).reshape(b_s, -1, h, d_k).transpose(0, 2, 3, 1)                # (b,h,dk,nk)
    v = (jnp.matmul(x, params["wv"], precision=hp) + params["bv"][0]
         ).reshape(b_s, -1, h, d_v).transpose(0, 2, 1, 3)                # (b,h,nk,dv)

    att = jnp.einsum("bhqd,bhdk->bhqk", q, k, precision=hp) / np.sqrt(d_k)
    att = (jnp.einsum("oi,biqk->boqk", params["wt"], att, precision=hp)
           + params["bt"][None, :, None, None])                          # 1x1 conv over heads
    att = jax.nn.softmax(att, axis=-1)
    out = jnp.einsum("bhqk,bhkd->bhqd", att, v, precision=hp)
    out = out.transpose(0, 2, 1, 3).reshape(b_s, nq, h * d_v)
    return jnp.matmul(out, params["wo"], precision=hp) + params["bo"][0]


# --------------------------------------------------------------------------
# Deterministic parameter init (xavier-normal weights; small nonzero biases so
# all folded-bias paths are exercised — the module zero-inits biases, which is
# a subset of this).
# --------------------------------------------------------------------------
def init_params(key, d_model, d_k, d_v, h):
    ks = jax.random.split(key, 14)

    def xavier(k, shape):
        std = np.sqrt(2.0 / (shape[0] + shape[1]))
        return (std * jax.random.normal(k, shape)).astype(jnp.float32)

    def small(k, shape):
        return (0.1 * jax.random.normal(k, shape)).astype(jnp.float32)

    return {
        "wq": xavier(ks[0], (d_model, h * d_k)), "bq": small(ks[1], (1, h * d_k)),
        "wk": xavier(ks[2], (d_model, h * d_k)), "bk": small(ks[3], (1, h * d_k)),
        "wv": xavier(ks[4], (d_model, h * d_v)), "bv": small(ks[5], (1, h * d_v)),
        "wo": xavier(ks[6], (h * d_v, d_model)), "bo": small(ks[7], (1, d_model)),
        # depthwise sr_conv weight (d_model,1,1,1) flattened to per-channel scale
        "sr_w": jax.random.normal(ks[8], (1, d_model)).astype(jnp.float32),
        "sr_b": small(ks[9], (1, d_model)),
        # LayerNorm
        "ln_g": (1.0 + 0.1 * jax.random.normal(ks[10], (1, d_model))).astype(jnp.float32),
        "ln_b": small(ks[11], (1, d_model)),
        # transform conv1x1 over heads: weight (h,h), bias (h,) (bias cancels in softmax)
        "wt": xavier(ks[12], (h, h)),
        "bt": jax.random.normal(ks[13], (h,)).astype(jnp.float32),
    }


if __name__ == "__main__":
    # small shapes consistent with the module: nq = H*W, nk = ceil(H/2)*ceil(W/2)
    b_s, d_model, d_k, d_v, h = 2, 32, 8, 8, 4
    H = W = 8
    ratio = 2
    nq = H * W

    key = jax.random.PRNGKey(0)
    kq, kp = jax.random.split(key)
    queries = jax.random.normal(kq, (b_s, nq, d_model), jnp.float32)
    # The kernel streams queries as bf16 (deliberate perf trade-off); pre-round
    # the test inputs to bf16-representable values so the f32 reference
    # comparison measures kernel numerics, not the input quantization.
    queries = queries.astype(jnp.bfloat16).astype(jnp.float32)

    params = init_params(kp, d_model, d_k, d_v, h)

    # max_tq=32 -> 2 q-tiles per batch, exercising the K/V-scratch reuse path.
    out = famha_pallas(queries, params, H=H, W=W, h=h, d_k=d_k, d_v=d_v,
                       ratio=ratio, max_tq=32)
    out = jax.block_until_ready(out)

    ref = famha_ref(queries, params, H=H, W=W, h=h, d_k=d_k, d_v=d_v, ratio=ratio)
    ref = jax.block_until_ready(ref)

    # bf16 MXU inputs (f32 accumulation) + approx softmax reciprocal -> relaxed tolerance
    if not bool(jnp.allclose(out, ref, atol=4e-2, rtol=4e-2)):
        raise AssertionError(
            f"mismatch: max abs err = {float(jnp.max(jnp.abs(out - ref)))}")
    print("KERNEL_OK")
</pallas_src>

<mosaic_0001>
module attributes {stable_mosaic.version = 11 : i64} {
  func.func @famha_kernel(%arg0: i32, %arg1: i32, %arg2: memref<1x32x32xbf16, #tpu.memory_space<vmem>>, %arg3: memref<1x16x32xf32, #tpu.memory_space<vmem>>, %arg4: memref<1x32xf32, #tpu.memory_space<vmem>>, %arg5: memref<1x32xf32, #tpu.memory_space<vmem>>, %arg6: memref<1x32xf32, #tpu.memory_space<vmem>>, %arg7: memref<1x32xf32, #tpu.memory_space<vmem>>, %arg8: memref<32x32xbf16, #tpu.memory_space<vmem>>, %arg9: memref<1x32xf32, #tpu.memory_space<vmem>>, %arg10: memref<32x32xbf16, #tpu.memory_space<vmem>>, %arg11: memref<1x32xf32, #tpu.memory_space<vmem>>, %arg12: memref<32x32xbf16, #tpu.memory_space<vmem>>, %arg13: memref<1x32xf32, #tpu.memory_space<vmem>>, %arg14: memref<4x4xf32, #tpu.memory_space<smem>>, %arg15: memref<32x32xbf16, #tpu.memory_space<vmem>>, %arg16: memref<1x32xf32, #tpu.memory_space<vmem>>, %arg17: memref<1x32x32xf32, #tpu.memory_space<vmem>>, %arg18: memref<16x32xbf16, #tpu.memory_space<vmem>>, %arg19: memref<16x32xbf16, #tpu.memory_space<vmem>>) attributes {dimension_semantics = [#tpu.dimension_semantics<parallel>, #tpu.dimension_semantics<arbitrary>], iteration_bounds = array<i64: 2, 2>, scalar_prefetch = 0 : i64, scratch_operands = 2 : i64, tpu.core_type = #tpu.core_type<tc>, window_params = [{transform_indices = @transform_0, window_bounds = array<i64: 1, 32, 32>}, {transform_indices = @transform_1, window_bounds = array<i64: 1, 16, 32>}, {pipeline_mode = #tpu.pipeline_mode<synchronous>, transform_indices = @transform_2, window_bounds = array<i64: 1, 32>}, {pipeline_mode = #tpu.pipeline_mode<synchronous>, transform_indices = @transform_3, window_bounds = array<i64: 1, 32>}, {pipeline_mode = #tpu.pipeline_mode<synchronous>, transform_indices = @transform_4, window_bounds = array<i64: 1, 32>}, {pipeline_mode = #tpu.pipeline_mode<synchronous>, transform_indices = @transform_5, window_bounds = array<i64: 1, 32>}, {pipeline_mode = #tpu.pipeline_mode<synchronous>, transform_indices = @transform_6, window_bounds = array<i64: 32, 32>}, {pipeline_mode = #tpu.pipeline_mode<synchronous>, transform_indices = @transform_7, window_bounds = array<i64: 1, 32>}, {pipeline_mode = #tpu.pipeline_mode<synchronous>, transform_indices = @transform_8, window_bounds = array<i64: 32, 32>}, {pipeline_mode = #tpu.pipeline_mode<synchronous>, transform_indices = @transform_9, window_bounds = array<i64: 1, 32>}, {pipeline_mode = #tpu.pipeline_mode<synchronous>, transform_indices = @transform_10, window_bounds = array<i64: 32, 32>}, {pipeline_mode = #tpu.pipeline_mode<synchronous>, transform_indices = @transform_11, window_bounds = array<i64: 1, 32>}, {transform_indices = @transform_12, window_bounds = array<i64: 4, 4>}, {pipeline_mode = #tpu.pipeline_mode<synchronous>, transform_indices = @transform_13, window_bounds = array<i64: 32, 32>}, {pipeline_mode = #tpu.pipeline_mode<synchronous>, transform_indices = @transform_14, window_bounds = array<i64: 1, 32>}, {transform_indices = @transform_15, window_bounds = array<i64: 1, 32, 32>}]} {
    %c0_i32 = arith.constant 0 : i32
    %0 = arith.cmpi eq, %arg1, %c0_i32 : i32
    %1 = arith.extui %0 : i1 to i32
    %c0_i32_0 = arith.constant 0 : i32
    %2 = arith.cmpi ne, %1, %c0_i32_0 : i32
    scf.if %2 {
      %c0_82 = arith.constant 0 : index
      %c0_83 = arith.constant 0 : index
      %c0_84 = arith.constant 0 : index
      %156 = vector.load %arg3[%c0_82, %c0_83, %c0_84] : memref<1x16x32xf32, #tpu.memory_space<vmem>>, vector<1x16x32xf32>
      %157 = vector.shape_cast %156 : vector<1x16x32xf32> to vector<16x32xf32>
      %c0_85 = arith.constant 0 : index
      %c0_86 = arith.constant 0 : index
      %158 = vector.load %arg4[%c0_85, %c0_86] : memref<1x32xf32, #tpu.memory_space<vmem>>, vector<1x32xf32>
      %159 = vector.broadcast %158 : vector<1x32xf32> to vector<16x32xf32>
      %160 = arith.mulf %157, %159 : vector<16x32xf32>
      %c0_87 = arith.constant 0 : index
      %c0_88 = arith.constant 0 : index
      %161 = vector.load %arg5[%c0_87, %c0_88] : memref<1x32xf32, #tpu.memory_space<vmem>>, vector<1x32xf32>
      %162 = vector.broadcast %161 : vector<1x32xf32> to vector<16x32xf32>
      %163 = arith.addf %160, %162 : vector<16x32xf32>
      %cst_89 = arith.constant dense<0.000000e+00> : vector<16xf32>
      %164 = vector.multi_reduction <add>, %163, %cst_89 [1] : vector<16x32xf32> to vector<16xf32>
      %165 = vector.shape_cast %164 : vector<16xf32> to vector<16x1xf32>
      %cst_90 = arith.constant 3.200000e+01 : f32
      %166 = vector.broadcast %cst_90 : f32 to vector<16x1xf32>
      %167 = arith.divf %165, %166 : vector<16x1xf32>
      %168 = vector.broadcast %167 : vector<16x1xf32> to vector<16x32xf32>
      %169 = arith.subf %163, %168 : vector<16x32xf32>
      %170 = arith.mulf %169, %169 : vector<16x32xf32>
      %cst_91 = arith.constant dense<0.000000e+00> : vector<16xf32>
      %171 = vector.multi_reduction <add>, %170, %cst_91 [1] : vector<16x32xf32> to vector<16xf32>
      %172 = vector.shape_cast %171 : vector<16xf32> to vector<16x1xf32>
      %cst_92 = arith.constant 3.200000e+01 : f32
      %173 = vector.broadcast %cst_92 : f32 to vector<16x1xf32>
      %174 = arith.divf %172, %173 : vector<16x1xf32>
      %cst_93 = arith.constant 9.99999974E-6 : f32
      %175 = vector.broadcast %cst_93 : f32 to vector<16x1xf32>
      %176 = arith.addf %174, %175 : vector<16x1xf32>
      %177 = math.rsqrt %176 : vector<16x1xf32>
      %178 = vector.broadcast %177 : vector<16x1xf32> to vector<16x32xf32>
      %179 = arith.mulf %169, %178 : vector<16x32xf32>
      %c0_94 = arith.constant 0 : index
      %c0_95 = arith.constant 0 : index
      %180 = vector.load %arg6[%c0_94, %c0_95] : memref<1x32xf32, #tpu.memory_space<vmem>>, vector<1x32xf32>
      %181 = vector.broadcast %180 : vector<1x32xf32> to vector<16x32xf32>
      %182 = arith.mulf %179, %181 : vector<16x32xf32>
      %c0_96 = arith.constant 0 : index
      %c0_97 = arith.constant 0 : index
      %183 = vector.load %arg7[%c0_96, %c0_97] : memref<1x32xf32, #tpu.memory_space<vmem>>, vector<1x32xf32>
      %184 = vector.broadcast %183 : vector<1x32xf32> to vector<16x32xf32>
      %185 = arith.addf %182, %184 : vector<16x32xf32>
      %186 = arith.truncf %185 : vector<16x32xf32> to vector<16x32xbf16>
      %c0_98 = arith.constant 0 : index
      %c0_99 = arith.constant 0 : index
      %187 = vector.load %arg10[%c0_98, %c0_99] : memref<32x32xbf16, #tpu.memory_space<vmem>>, vector<32x32xbf16>
      %cst_100 = arith.constant dense<0.000000e+00> : vector<16x32xf32>
      %188 = tpu.matmul %186, %187, %cst_100 {dimension_numbers = #tpu.dot_dimension_numbers<[1], [0], [0], [1], [0, 0, 1, 1], [], []>} : vector<16x32xbf16>, vector<32x32xbf16>, vector<16x32xf32> -> vector<16x32xf32>
      %c0_101 = arith.constant 0 : index
      %c0_102 = arith.constant 0 : index
      %189 = vector.load %arg11[%c0_101, %c0_102] : memref<1x32xf32, #tpu.memory_space<vmem>>, vector<1x32xf32>
      %190 = vector.broadcast %189 : vector<1x32xf32> to vector<16x32xf32>
      %191 = arith.addf %188, %190 : vector<16x32xf32>
      %192 = arith.truncf %191 : vector<16x32xf32> to vector<16x32xbf16>
      %c0_103 = arith.constant 0 : index
      %c0_104 = arith.constant 0 : index
      %193 = vector.load %arg18[%c0_103, %c0_104] : memref<16x32xbf16, #tpu.memory_space<vmem>>, vector<16x32xbf16>
      tpu.vector_store %arg18[%c0_103, %c0_104], %192 {strides = array<i32>} : memref<16x32xbf16, #tpu.memory_space<vmem>>, vector<16x32xbf16>,
      %c0_105 = arith.constant 0 : index
      %c0_106 = arith.constant 0 : index
      %194 = vector.load %arg12[%c0_105, %c0_106] : memref<32x32xbf16, #tpu.memory_space<vmem>>, vector<32x32xbf16>
      %cst_107 = arith.constant dense<0.000000e+00> : vector<16x32xf32>
      %195 = tpu.matmul %186, %194, %cst_107 {dimension_numbers = #tpu.dot_dimension_numbers<[1], [0], [0], [1], [0, 0, 1, 1], [], []>} : vector<16x32xbf16>, vector<32x32xbf16>, vector<16x32xf32> -> vector<16x32xf32>
      %c0_108 = arith.constant 0 : index
      %c0_109 = arith.constant 0 : index
      %196 = vector.load %arg13[%c0_108, %c0_109] : memref<1x32xf32, #tpu.memory_space<vmem>>, vector<1x32xf32>
      %197 = vector.broadcast %196 : vector<1x32xf32> to vector<16x32xf32>
      %198 = arith.addf %195, %197 : vector<16x32xf32>
      %199 = arith.truncf %198 : vector<16x32xf32> to vector<16x32xbf16>
      %c0_110 = arith.constant 0 : index
      %c0_111 = arith.constant 0 : index
      %200 = vector.load %arg19[%c0_110, %c0_111] : memref<16x32xbf16, #tpu.memory_space<vmem>>, vector<16x32xbf16>
      tpu.vector_store %arg19[%c0_110, %c0_111], %199 {strides = array<i32>} : memref<16x32xbf16, #tpu.memory_space<vmem>>, vector<16x32xbf16>,
    } else {
    }
    %c0 = arith.constant 0 : index
    %c0_1 = arith.constant 0 : index
    %c0_2 = arith.constant 0 : index
    %3 = vector.load %arg2[%c0, %c0_1, %c0_2] : memref<1x32x32xbf16, #tpu.memory_space<vmem>>, vector<1x32x32xbf16>
    %4 = vector.shape_cast %3 : vector<1x32x32xbf16> to vector<32x32xbf16>
    %c0_3 = arith.constant 0 : index
    %c0_4 = arith.constant 0 : index
    %5 = vector.load %arg8[%c0_3, %c0_4] : memref<32x32xbf16, #tpu.memory_space<vmem>>, vector<32x32xbf16>
    %cst = arith.constant dense<0.000000e+00> : vector<32x32xf32>
    %6 = tpu.matmul %4, %5, %cst {dimension_numbers = #tpu.dot_dimension_numbers<[1], [0], [0], [1], [0, 0, 1, 1], [], []>} : vector<32x32xbf16>, vector<32x32xbf16>, vector<32x32xf32> -> vector<32x32xf32>
    %c0_5 = arith.constant 0 : index
    %c0_6 = arith.constant 0 : index
    %7 = vector.load %arg9[%c0_5, %c0_6] : memref<1x32xf32, #tpu.memory_space<vmem>>, vector<1x32xf32>
    %8 = vector.broadcast %7 : vector<1x32xf32> to vector<32x32xf32>
    %9 = arith.addf %6, %8 : vector<32x32xf32>
    %10 = arith.truncf %9 : vector<32x32xf32> to vector<32x32xbf16>
    %11 = vector.extract_strided_slice %10 {offsets = [0, 0], sizes = [32, 8], strides = [1, 1]} : vector<32x32xbf16> to vector<32x8xbf16>
    %c0_7 = arith.constant 0 : index
    %c0_8 = arith.constant 0 : index
    %12 = vector.load %arg18[%c0_7, %c0_8] : memref<16x32xbf16, #tpu.memory_space<vmem>>, vector<16x8xbf16>
    %cst_9 = arith.constant dense<0.000000e+00> : vector<32x16xf32>
    %13 = tpu.matmul %11, %12, %cst_9 {dimension_numbers = #tpu.dot_dimension_numbers<[1], [1], [0], [0], [0, 0, 1, 0], [], []>} : vector<32x8xbf16>, vector<16x8xbf16>, vector<32x16xf32> -> vector<32x16xf32>
    %14 = vector.extract_strided_slice %10 {offsets = [0, 8], sizes = [32, 8], strides = [1, 1]} : vector<32x32xbf16> to vector<32x8xbf16>
    %c0_10 = arith.constant 0 : index
    %c8 = arith.constant 8 : index
    %15 = vector.load %arg18[%c0_10, %c8] : memref<16x32xbf16, #tpu.memory_space<vmem>>, vector<16x8xbf16>
    %cst_11 = arith.constant dense<0.000000e+00> : vector<32x16xf32>
    %16 = tpu.matmul %14, %15, %cst_11 {dimension_numbers = #tpu.dot_dimension_numbers<[1], [1], [0], [0], [0, 0, 1, 0], [], []>} : vector<32x8xbf16>, vector<16x8xbf16>, vector<32x16xf32> -> vector<32x16xf32>
    %17 = vector.extract_strided_slice %10 {offsets = [0, 16], sizes = [32, 8], strides = [1, 1]} : vector<32x32xbf16> to vector<32x8xbf16>
    %c0_12 = arith.constant 0 : index
    %c16 = arith.constant 16 : index
    %18 = vector.load %arg18[%c0_12, %c16] : memref<16x32xbf16, #tpu.memory_space<vmem>>, vector<16x8xbf16>
    %cst_13 = arith.constant dense<0.000000e+00> : vector<32x16xf32>
    %19 = tpu.matmul %17, %18, %cst_13 {dimension_numbers = #tpu.dot_dimension_numbers<[1], [1], [0], [0], [0, 0, 1, 0], [], []>} : vector<32x8xbf16>, vector<16x8xbf16>, vector<32x16xf32> -> vector<32x16xf32>
    %20 = vector.extract_strided_slice %10 {offsets = [0, 24], sizes = [32, 8], strides = [1, 1]} : vector<32x32xbf16> to vector<32x8xbf16>
    %c0_14 = arith.constant 0 : index
    %c24 = arith.constant 24 : index
    %21 = vector.load %arg18[%c0_14, %c24] : memref<16x32xbf16, #tpu.memory_space<vmem>>, vector<16x8xbf16>
    %cst_15 = arith.constant dense<0.000000e+00> : vector<32x16xf32>
    %22 = tpu.matmul %20, %21, %cst_15 {dimension_numbers = #tpu.dot_dimension_numbers<[1], [1], [0], [0], [0, 0, 1, 0], [], []>} : vector<32x8xbf16>, vector<16x8xbf16>, vector<32x16xf32> -> vector<32x16xf32>
    %c0_16 = arith.constant 0 : index
    %c0_17 = arith.constant 0 : index
    %23 = memref.load %arg14[%c0_16, %c0_17] : memref<4x4xf32, #tpu.memory_space<smem>>
    %24 = vector.broadcast %23 : f32 to vector<32x16xf32>
    %25 = arith.mulf %13, %24 : vector<32x16xf32>
    %c0_18 = arith.constant 0 : index
    %c1 = arith.constant 1 : index
    %26 = memref.load %arg14[%c0_18, %c1] : memref<4x4xf32, #tpu.memory_space<smem>>
    %27 = vector.broadcast %26 : f32 to vector<32x16xf32>
    %28 = arith.mulf %16, %27 : vector<32x16xf32>
    %29 = arith.addf %25, %28 : vector<32x16xf32>
    %c0_19 = arith.constant 0 : index
    %c2 = arith.constant 2 : index
    %30 = memref.load %arg14[%c0_19, %c2] : memref<4x4xf32, #tpu.memory_space<smem>>
    %31 = vector.broadcast %30 : f32 to vector<32x16xf32>
    %32 = arith.mulf %19, %31 : vector<32x16xf32>
    %33 = arith.addf %29, %32 : vector<32x16xf32>
    %c0_20 = arith.constant 0 : index
    %c3 = arith.constant 3 : index
    %34 = memref.load %arg14[%c0_20, %c3] : memref<4x4xf32, #tpu.memory_space<smem>>
    %35 = vector.broadcast %34 : f32 to vector<32x16xf32>
    %36 = arith.mulf %22, %35 : vector<32x16xf32>
    %37 = arith.addf %33, %36 : vector<32x16xf32>
    %cst_21 = arith.constant dense<0xFF800000> : vector<32xf32>
    %38 = vector.multi_reduction <maximumf>, %37, %cst_21 [1] : vector<32x16xf32> to vector<32xf32>
    %39 = vector.shape_cast %38 : vector<32xf32> to vector<32x1xf32>
    %40 = vector.broadcast %39 : vector<32x1xf32> to vector<32x16xf32>
    %41 = arith.subf %37, %40 : vector<32x16xf32>
    %42 = math.exp %41 : vector<32x16xf32>
    %cst_22 = arith.constant dense<0.000000e+00> : vector<32xf32>
    %43 = vector.multi_reduction <add>, %42, %cst_22 [1] : vector<32x16xf32> to vector<32xf32>
    %44 = vector.shape_cast %43 : vector<32xf32> to vector<32x1xf32>
    %45 = tpu.reciprocal %44 {approx = true} : vector<32x1xf32> -> vector<32x1xf32>
    %46 = vector.broadcast %45 : vector<32x1xf32> to vector<32x16xf32>
    %47 = arith.mulf %42, %46 : vector<32x16xf32>
    %48 = arith.truncf %47 : vector<32x16xf32> to vector<32x16xbf16>
    %c0_23 = arith.constant 0 : index
    %c0_24 = arith.constant 0 : index
    %49 = vector.load %arg19[%c0_23, %c0_24] : memref<16x32xbf16, #tpu.memory_space<vmem>>, vector<16x8xbf16>
    %cst_25 = arith.constant dense<0.000000e+00> : vector<32x8xf32>
    %50 = tpu.matmul %48, %49, %cst_25 {dimension_numbers = #tpu.dot_dimension_numbers<[1], [0], [0], [1], [0, 0, 1, 1], [], []>} : vector<32x16xbf16>, vector<16x8xbf16>, vector<32x8xf32> -> vector<32x8xf32>
    %51 = arith.truncf %50 : vector<32x8xf32> to vector<32x8xbf16>
    %c0_26 = arith.constant 0 : index
    %c0_27 = arith.constant 0 : index
    %52 = vector.load %arg15[%c0_26, %c0_27] : memref<32x32xbf16, #tpu.memory_space<vmem>>, vector<8x32xbf16>
    %cst_28 = arith.constant dense<0.000000e+00> : vector<32x32xf32>
    %53 = tpu.matmul %51, %52, %cst_28 {dimension_numbers = #tpu.dot_dimension_numbers<[1], [0], [0], [1], [0, 0, 1, 1], [], []>} : vector<32x8xbf16>, vector<8x32xbf16>, vector<32x32xf32> -> vector<32x32xf32>
    %c1_29 = arith.constant 1 : index
    %c0_30 = arith.constant 0 : index
    %54 = memref.load %arg14[%c1_29, %c0_30] : memref<4x4xf32, #tpu.memory_space<smem>>
    %55 = vector.broadcast %54 : f32 to vector<32x16xf32>
    %56 = arith.mulf %13, %55 : vector<32x16xf32>
    %c1_31 = arith.constant 1 : index
    %c1_32 = arith.constant 1 : index
    %57 = memref.load %arg14[%c1_31, %c1_32] : memref<4x4xf32, #tpu.memory_space<smem>>
    %58 = vector.broadcast %57 : f32 to vector<32x16xf32>
    %59 = arith.mulf %16, %58 : vector<32x16xf32>
    %60 = arith.addf %56, %59 : vector<32x16xf32>
    %c1_33 = arith.constant 1 : index
    %c2_34 = arith.constant 2 : index
    %61 = memref.load %arg14[%c1_33, %c2_34] : memref<4x4xf32, #tpu.memory_space<smem>>
    %62 = vector.broadcast %61 : f32 to vector<32x16xf32>
    %63 = arith.mulf %19, %62 : vector<32x16xf32>
    %64 = arith.addf %60, %63 : vector<32x16xf32>
    %c1_35 = arith.constant 1 : index
    %c3_36 = arith.constant 3 : index
    %65 = memref.load %arg14[%c1_35, %c3_36] : memref<4x4xf32, #tpu.memory_space<smem>>
    %66 = vector.broadcast %65 : f32 to vector<32x16xf32>
    %67 = arith.mulf %22, %66 : vector<32x16xf32>
    %68 = arith.addf %64, %67 : vector<32x16xf32>
    %cst_37 = arith.constant dense<0xFF800000> : vector<32xf32>
    %69 = vector.multi_reduction <maximumf>, %68, %cst_37 [1] : vector<32x16xf32> to vector<32xf32>
    %70 = vector.shape_cast %69 : vector<32xf32> to vector<32x1xf32>
    %71 = vector.broadcast %70 : vector<32x1xf32> to vector<32x16xf32>
    %72 = arith.subf %68, %71 : vector<32x16xf32>
    %73 = math.exp %72 : vector<32x16xf32>
    %cst_38 = arith.constant dense<0.000000e+00> : vector<32xf32>
    %74 = vector.multi_reduction <add>, %73, %cst_38 [1] : vector<32x16xf32> to vector<32xf32>
    %75 = vector.shape_cast %74 : vector<32xf32> to vector<32x1xf32>
    %76 = tpu.reciprocal %75 {approx = true} : vector<32x1xf32> -> vector<32x1xf32>
    %77 = vector.broadcast %76 : vector<32x1xf32> to vector<32x16xf32>
    %78 = arith.mulf %73, %77 : vector<32x16xf32>
    %79 = arith.truncf %78 : vector<32x16xf32> to vector<32x16xbf16>
    %c0_39 = arith.constant 0 : index
    %c8_40 = arith.constant 8 : index
    %80 = vector.load %arg19[%c0_39, %c8_40] : memref<16x32xbf16, #tpu.memory_space<vmem>>, vector<16x8xbf16>
    %cst_41 = arith.constant dense<0.000000e+00> : vector<32x8xf32>
    %81 = tpu.matmul %79, %80, %cst_41 {dimension_numbers = #tpu.dot_dimension_numbers<[1], [0], [0], [1], [0, 0, 1, 1], [], []>} : vector<32x16xbf16>, vector<16x8xbf16>, vector<32x8xf32> -> vector<32x8xf32>
    %82 = arith.truncf %81 : vector<32x8xf32> to vector<32x8xbf16>
    %c8_42 = arith.constant 8 : index
    %c0_43 = arith.constant 0 : index
    %83 = vector.load %arg15[%c8_42, %c0_43] : memref<32x32xbf16, #tpu.memory_space<vmem>>, vector<8x32xbf16>
    %cst_44 = arith.constant dense<0.000000e+00> : vector<32x32xf32>
    %84 = tpu.matmul %82, %83, %cst_44 {dimension_numbers = #tpu.dot_dimension_numbers<[1], [0], [0], [1], [0, 0, 1, 1], [], []>} : vector<32x8xbf16>, vector<8x32xbf16>, vector<32x32xf32> -> vector<32x32xf32>
    %85 = arith.addf %53, %84 : vector<32x32xf32>
    %c2_45 = arith.constant 2 : index
    %c0_46 = arith.constant 0 : index
    %86 = memref.load %arg14[%c2_45, %c0_46] : memref<4x4xf32, #tpu.memory_space<smem>>
    %87 = vector.broadcast %86 : f32 to vector<32x16xf32>
    %88 = arith.mulf %13, %87 : vector<32x16xf32>
    %c2_47 = arith.constant 2 : index
    %c1_48 = arith.constant 1 : index
    %89 = memref.load %arg14[%c2_47, %c1_48] : memref<4x4xf32, #tpu.memory_space<smem>>
    %90 = vector.broadcast %89 : f32 to vector<32x16xf32>
    %91 = arith.mulf %16, %90 : vector<32x16xf32>
    %92 = arith.addf %88, %91 : vector<32x16xf32>
    %c2_49 = arith.constant 2 : index
    %c2_50 = arith.constant 2 : index
    %93 = memref.load %arg14[%c2_49, %c2_50] : memref<4x4xf32, #tpu.memory_space<smem>>
    %94 = vector.broadcast %93 : f32 to vector<32x16xf32>
    %95 = arith.mulf %19, %94 : vector<32x16xf32>
    %96 = arith.addf %92, %95 : vector<32x16xf32>
    %c2_51 = arith.constant 2 : index
    %c3_52 = arith.constant 3 : index
    %97 = memref.load %arg14[%c2_51, %c3_52] : memref<4x4xf32, #tpu.memory_space<smem>>
    %98 = vector.broadcast %97 : f32 to vector<32x16xf32>
    %99 = arith.mulf %22, %98 : vector<32x16xf32>
    %100 = arith.addf %96, %99 : vector<32x16xf32>
    %cst_53 = arith.constant dense<0xFF800000> : vector<32xf32>
    %101 = vector.multi_reduction <maximumf>, %100, %cst_53 [1] : vector<32x16xf32> to vector<32xf32>
    %102 = vector.shape_cast %101 : vector<32xf32> to vector<32x1xf32>
    %103 = vector.broadcast %102 : vector<32x1xf32> to vector<32x16xf32>
    %104 = arith.subf %100, %103 : vector<32x16xf32>
    %105 = math.exp %104 : vector<32x16xf32>
    %cst_54 = arith.constant dense<0.000000e+00> : vector<32xf32>
    %106 = vector.multi_reduction <add>, %105, %cst_54 [1] : vector<32x16xf32> to vector<32xf32>
    %107 = vector.shape_cast %106 : vector<32xf32> to vector<32x1xf32>
    %108 = tpu.reciprocal %107 {approx = true} : vector<32x1xf32> -> vector<32x1xf32>
    %109 = vector.broadcast %108 : vector<32x1xf32> to vector<32x16xf32>
    %110 = arith.mulf %105, %109 : vector<32x16xf32>
    %111 = arith.truncf %110 : vector<32x16xf32> to vector<32x16xbf16>
    %c0_55 = arith.constant 0 : index
    %c16_56 = arith.constant 16 : index
    %112 = vector.load %arg19[%c0_55, %c16_56] : memref<16x32xbf16, #tpu.memory_space<vmem>>, vector<16x8xbf16>
    %cst_57 = arith.constant dense<0.000000e+00> : vector<32x8xf32>
    %113 = tpu.matmul %111, %112, %cst_57 {dimension_numbers = #tpu.dot_dimension_numbers<[1], [0], [0], [1], [0, 0, 1, 1], [], []>} : vector<32x16xbf16>, vector<16x8xbf16>, vector<32x8xf32> -> vector<32x8xf32>
    %114 = arith.truncf %113 : vector<32x8xf32> to vector<32x8xbf16>
    %c16_58 = arith.constant 16 : index
    %c0_59 = arith.constant 0 : index
    %115 = vector.load %arg15[%c16_58, %c0_59] : memref<32x32xbf16, #tpu.memory_space<vmem>>, vector<8x32xbf16>
    %cst_60 = arith.constant dense<0.000000e+00> : vector<32x32xf32>
    %116 = tpu.matmul %114, %115, %cst_60 {dimension_numbers = #tpu.dot_dimension_numbers<[1], [0], [0], [1], [0, 0, 1, 1], [], []>} : vector<32x8xbf16>, vector<8x32xbf16>, vector<32x32xf32> -> vector<32x32xf32>
    %117 = arith.addf %85, %116 : vector<32x32xf32>
    %c3_61 = arith.constant 3 : index
    %c0_62 = arith.constant 0 : index
    %118 = memref.load %arg14[%c3_61, %c0_62] : memref<4x4xf32, #tpu.memory_space<smem>>
    %119 = vector.broadcast %118 : f32 to vector<32x16xf32>
    %120 = arith.mulf %13, %119 : vector<32x16xf32>
    %c3_63 = arith.constant 3 : index
    %c1_64 = arith.constant 1 : index
    %121 = memref.load %arg14[%c3_63, %c1_64] : memref<4x4xf32, #tpu.memory_space<smem>>
    %122 = vector.broadcast %121 : f32 to vector<32x16xf32>
    %123 = arith.mulf %16, %122 : vector<32x16xf32>
    %124 = arith.addf %120, %123 : vector<32x16xf32>
    %c3_65 = arith.constant 3 : index
    %c2_66 = arith.constant 2 : index
    %125 = memref.load %arg14[%c3_65, %c2_66] : memref<4x4xf32, #tpu.memory_space<smem>>
    %126 = vector.broadcast %125 : f32 to vector<32x16xf32>
    %127 = arith.mulf %19, %126 : vector<32x16xf32>
    %128 = arith.addf %124, %127 : vector<32x16xf32>
    %c3_67 = arith.constant 3 : index
    %c3_68 = arith.constant 3 : index
    %129 = memref.load %arg14[%c3_67, %c3_68] : memref<4x4xf32, #tpu.memory_space<smem>>
    %130 = vector.broadcast %129 : f32 to vector<32x16xf32>
    %131 = arith.mulf %22, %130 : vector<32x16xf32>
    %132 = arith.addf %128, %131 : vector<32x16xf32>
    %cst_69 = arith.constant dense<0xFF800000> : vector<32xf32>
    %133 = vector.multi_reduction <maximumf>, %132, %cst_69 [1] : vector<32x16xf32> to vector<32xf32>
    %134 = vector.shape_cast %133 : vector<32xf32> to vector<32x1xf32>
    %135 = vector.broadcast %134 : vector<32x1xf32> to vector<32x16xf32>
    %136 = arith.subf %132, %135 : vector<32x16xf32>
    %137 = math.exp %136 : vector<32x16xf32>
    %cst_70 = arith.constant dense<0.000000e+00> : vector<32xf32>
    %138 = vector.multi_reduction <add>, %137, %cst_70 [1] : vector<32x16xf32> to vector<32xf32>
    %139 = vector.shape_cast %138 : vector<32xf32> to vector<32x1xf32>
    %140 = tpu.reciprocal %139 {approx = true} : vector<32x1xf32> -> vector<32x1xf32>
    %141 = vector.broadcast %140 : vector<32x1xf32> to vector<32x16xf32>
    %142 = arith.mulf %137, %141 : vector<32x16xf32>
    %143 = arith.truncf %142 : vector<32x16xf32> to vector<32x16xbf16>
    %c0_71 = arith.constant 0 : index
    %c24_72 = arith.constant 24 : index
    %144 = vector.load %arg19[%c0_71, %c24_72] : memref<16x32xbf16, #tpu.memory_space<vmem>>, vector<16x8xbf16>
    %cst_73 = arith.constant dense<0.000000e+00> : vector<32x8xf32>
    %145 = tpu.matmul %143, %144, %cst_73 {dimension_numbers = #tpu.dot_dimension_numbers<[1], [0], [0], [1], [0, 0, 1, 1], [], []>} : vector<32x16xbf16>, vector<16x8xbf16>, vector<32x8xf32> -> vector<32x8xf32>
    %146 = arith.truncf %145 : vector<32x8xf32> to vector<32x8xbf16>
    %c24_74 = arith.constant 24 : index
    %c0_75 = arith.constant 0 : index
    %147 = vector.load %arg15[%c24_74, %c0_75] : memref<32x32xbf16, #tpu.memory_space<vmem>>, vector<8x32xbf16>
    %cst_76 = arith.constant dense<0.000000e+00> : vector<32x32xf32>
    %148 = tpu.matmul %146, %147, %cst_76 {dimension_numbers = #tpu.dot_dimension_numbers<[1], [0], [0], [1], [0, 0, 1, 1], [], []>} : vector<32x8xbf16>, vector<8x32xbf16>, vector<32x32xf32> -> vector<32x32xf32>
    %149 = arith.addf %117, %148 : vector<32x32xf32>
    %c0_77 = arith.constant 0 : index
    %c0_78 = arith.constant 0 : index
    %150 = vector.load %arg16[%c0_77, %c0_78] : memref<1x32xf32, #tpu.memory_space<vmem>>, vector<1x32xf32>
    %151 = vector.broadcast %150 : vector<1x32xf32> to vector<32x32xf32>
    %152 = arith.addf %149, %151 : vector<32x32xf32>
    %c0_79 = arith.constant 0 : index
    %c0_80 = arith.constant 0 : index
    %c0_81 = arith.constant 0 : index
    %153 = vector.load %arg17[%c0_79, %c0_80, %c0_81] : memref<1x32x32xf32, #tpu.memory_space<vmem>>, vector<1x32x32xf32>
    %154 = vector.shape_cast %153 : vector<1x32x32xf32> to vector<32x32xf32>
    %155 = vector.shape_cast %152 : vector<32x32xf32> to vector<1x32x32xf32>
    tpu.vector_store %arg17[%c0_79, %c0_80, %c0_81], %155 {strides = array<i32>} : memref<1x32x32xf32, #tpu.memory_space<vmem>>, vector<1x32x32xf32>,
    return
  }
  func.func @transform_0(%arg0: i32, %arg1: i32) -> (i32, i32, i32) {
    %c0_i32 = arith.constant 0 : i32
    %c0_i32_0 = arith.constant 0 : i32
    return %arg0, %arg1, %c0_i32 : i32, i32, i32
  }
  func.func @transform_1(%arg0: i32, %arg1: i32) -> (i32, i32, i32) {
    %c0_i32 = arith.constant 0 : i32
    %c0_i32_0 = arith.constant 0 : i32
    %c0_i32_1 = arith.constant 0 : i32
    return %arg0, %c0_i32, %c0_i32_0 : i32, i32, i32
  }
  func.func @transform_2(%arg0: i32, %arg1: i32) -> (i32, i32) {
    %c0_i32 = arith.constant 0 : i32
    %c0_i32_0 = arith.constant 0 : i32
    %c0_i32_1 = arith.constant 0 : i32
    return %c0_i32, %c0_i32_0 : i32, i32
  }
  func.func @transform_3(%arg0: i32, %arg1: i32) -> (i32, i32) {
    %c0_i32 = arith.constant 0 : i32
    %c0_i32_0 = arith.constant 0 : i32
    %c0_i32_1 = arith.constant 0 : i32
    return %c0_i32, %c0_i32_0 : i32, i32
  }
  func.func @transform_4(%arg0: i32, %arg1: i32) -> (i32, i32) {
    %c0_i32 = arith.constant 0 : i32
    %c0_i32_0 = arith.constant 0 : i32
    %c0_i32_1 = arith.constant 0 : i32
    return %c0_i32, %c0_i32_0 : i32, i32
  }
  func.func @transform_5(%arg0: i32, %arg1: i32) -> (i32, i32) {
    %c0_i32 = arith.constant 0 : i32
    %c0_i32_0 = arith.constant 0 : i32
    %c0_i32_1 = arith.constant 0 : i32
    return %c0_i32, %c0_i32_0 : i32, i32
  }
  func.func @transform_6(%arg0: i32, %arg1: i32) -> (i32, i32) {
    %c0_i32 = arith.constant 0 : i32
    %c0_i32_0 = arith.constant 0 : i32
    %c0_i32_1 = arith.constant 0 : i32
    return %c0_i32, %c0_i32_0 : i32, i32
  }
  func.func @transform_7(%arg0: i32, %arg1: i32) -> (i32, i32) {
    %c0_i32 = arith.constant 0 : i32
    %c0_i32_0 = arith.constant 0 : i32
    %c0_i32_1 = arith.constant 0 : i32
    return %c0_i32, %c0_i32_0 : i32, i32
  }
  func.func @transform_8(%arg0: i32, %arg1: i32) -> (i32, i32) {
    %c0_i32 = arith.constant 0 : i32
    %c0_i32_0 = arith.constant 0 : i32
    %c0_i32_1 = arith.constant 0 : i32
    return %c0_i32, %c0_i32_0 : i32, i32
  }
  func.func @transform_9(%arg0: i32, %arg1: i32) -> (i32, i32) {
    %c0_i32 = arith.constant 0 : i32
    %c0_i32_0 = arith.constant 0 : i32
    %c0_i32_1 = arith.constant 0 : i32
    return %c0_i32, %c0_i32_0 : i32, i32
  }
  func.func @transform_10(%arg0: i32, %arg1: i32) -> (i32, i32) {
    %c0_i32 = arith.constant 0 : i32
    %c0_i32_0 = arith.constant 0 : i32
    %c0_i32_1 = arith.constant 0 : i32
    return %c0_i32, %c0_i32_0 : i32, i32
  }
  func.func @transform_11(%arg0: i32, %arg1: i32) -> (i32, i32) {
    %c0_i32 = arith.constant 0 : i32
    %c0_i32_0 = arith.constant 0 : i32
    %c0_i32_1 = arith.constant 0 : i32
    return %c0_i32, %c0_i32_0 : i32, i32
  }
  func.func @transform_12(%arg0: i32, %arg1: i32) -> (i32, i32) {
    %c0_i32 = arith.constant 0 : i32
    %c0_i32_0 = arith.constant 0 : i32
    %c0_i32_1 = arith.constant 0 : i32
    return %c0_i32, %c0_i32_0 : i32, i32
  }
  func.func @transform_13(%arg0: i32, %arg1: i32) -> (i32, i32) {
    %c0_i32 = arith.constant 0 : i32
    %c0_i32_0 = arith.constant 0 : i32
    %c0_i32_1 = arith.constant 0 : i32
    return %c0_i32, %c0_i32_0 : i32, i32
  }
  func.func @transform_14(%arg0: i32, %arg1: i32) -> (i32, i32) {
    %c0_i32 = arith.constant 0 : i32
    %c0_i32_0 = arith.constant 0 : i32
    %c0_i32_1 = arith.constant 0 : i32
    return %c0_i32, %c0_i32_0 : i32, i32
  }
  func.func @transform_15(%arg0: i32, %arg1: i32) -> (i32, i32, i32) {
    %c0_i32 = arith.constant 0 : i32
    %c0_i32_0 = arith.constant 0 : i32
    return %arg0, %arg1, %c0_i32 : i32, i32, i32
  }
}

</mosaic_0001>

<bundles_post_ra>
// kernel: tpu_custom_call.1
= control target key start
LH: loop header
LB: loop body
LE: loop exit
PB: predicated region body
PF: predicated region fallthrough
CT: control target
= control target key end

     0   :  { %s3224_s0 = inlined_call_operand.vmem [shape: bf16[2,64,32], index: 0, kind: input, shape index: {}]   ;;  %s3225_s1 = inlined_call_operand.vmem [shape: f32[2,16,32], index: 1, kind: input, shape index: {}]   ;;  %s3226_s2 = inlined_call_operand.vmem [shape: f32[1,32], index: 2, kind: input, shape index: {}]   ;;  %s3227_s3 = inlined_call_operand.hbm [shape: f32[1,32], index: 3, kind: input, shape index: {}]   ;;  %s3228_s4 = inlined_call_operand.vmem [shape: f32[1,32], index: 4, kind: input, shape index: {}]   ;;  %s3229_s5 = inlined_call_operand.vmem [shape: f32[1,32], index: 5, kind: input, shape index: {}]   ;;  %s3230_s6 = inlined_call_operand.vmem [shape: bf16[32,32], index: 6, kind: input, shape index: {}]   ;;  %s3231_s7 = inlined_call_operand.vmem [shape: f32[1,32], index: 7, kind: input, shape index: {}]   ;;  %s3232_s8 = inlined_call_operand.vmem [shape: bf16[32,32], index: 8, kind: input, shape index: {}]   ;;  %s3233_s9 = inlined_call_operand.vmem [shape: f32[1,32], index: 9, kind: input, shape index: {}]   ;;  %s3234_s10 = inlined_call_operand.vmem [shape: bf16[32,32], index: 10, kind: input, shape index: {}]   ;;  %s3235_s11 = inlined_call_operand.vmem [shape: f32[1,32], index: 11, kind: input, shape index: {}]   ;;  %s3236_s12 = inlined_call_operand.vmem [shape: f32[4,4], index: 12, kind: input, shape index: {}]   ;;  %s3237_s13 = inlined_call_operand.vmem [shape: bf16[32,32], index: 13, kind: input, shape index: {}]   ;;  %s3238_s14 = inlined_call_operand.vmem [shape: f32[1,32], index: 14, kind: input, shape index: {}]   ;;  %s3239_s15 = inlined_call_operand.vmem [shape: f32[2,64,32], index: 15, kind: output, shape index: {}]  }
   0x1   :  { %3249 = sst [smem:[#allocation15_spill]] %s3227_s3 }
   0x2   :  { %3250 = sst [smem:[#allocation16_spill]] %s3236_s12 }
   0x3   :  { %20 = vsyncpa [#allocation5], 0 }
   0x4   :  { %21 = vsyncpa [#allocation6], 0  ;;  %s2680_s18 = smov 0   ;;  %s2682_s19 = smov 0  }
   0x5   :  { %s2684_s20 = smov 0   ;;  %s2686_s21 = smov 0  }
   0x6   :  { %s2688_s22 = smov 0  }
   0x7 LB: > { %3251 = sst [smem:[#allocation10_spill]] %s2583_s20  ;;  %s2120_s23 = sadd.s32 4294967295, %s2591_s22   ;;  %s2591_s22 = sphi %s2688_s22, %s27_s22   ;;  %s2587_s21 = sphi %s2686_s21, %s3270_s21   ;;  %s2583_s20 = sphi %s2684_s20, %s3269_s20   ;;  %s2579_s19 = sphi %s2682_s19, %s3268_s19   ;;  %s2575_s18 = sphi %s2680_s18, %s3267_s18  }
   0x8   : > { %3252 = sst [smem:[#allocation11_spill]] %s2587_s21  ;;  %s36_s24 = sadd.s32 1, %s2583_s20 }
   0x9   : > { %3253 = sst [smem:[#allocation12_spill]] %s2591_s22  ;;  %p37_p0 = scmp.ge.s32.totalorder %s36_s24, 2 }
   0xa   : > { %s39_s25 = sadd.s32 1, %s2587_s21  ;;  %p2122_p1 = scmp.ge.s32.totalorder %s2591_s22, 1 }
   0xb   : > { %p399_p2 = scmp.lt.s32.totalorder %s2591_s22, 5  ;;  %s3272_s24 = smov (%p37_p0, %s36_s24), 0 }
   0xc   : > { %3254 = sst [smem:[#allocation13_spill]] %s3272_s24  ;;  %s3274_s25 = smov (!%p37_p0, %s39_s25), %s2587_s21 }
   0xd   : > { %p2713_p3 = pnand %p2122_p1, %p399_p2  ;;  %p41_p4 = scmp.ge.s32.totalorder %s3274_s25, 2 }
   0xe   : > { %p2717_p5 = scmp.eq.s32.totalorder %s2120_s23, 0  ;;  %s2593_s28 = smov [#allocation4]  }
   0xf   : > { %s3255_s26 = scalar_select %p2713_p3, 1, 0 }
  0x10   : > { %s3256_s27 = scalar_select %p2717_p5, 1, 0 }
  0x11   : > { %p2368_p6 = pneg %p2713_p3  ;;  %s3276_s25 = smov (%p41_p4, %s3274_s25), 0 }
  0x12   : > { %3257 = sst [smem:[#allocation14_spill]] %s3276_s25  ;;  %s415_s29 = sshll.u32 %s2593_s28, 4  ;;  %s416_s29 = int_to_ptr.vmem [resolvable:$true] %s415_s29 }
  0x13   : > { %p2727_p7 = pnand %p2717_p5, %p2368_p6  ;;  %s3259_s12 = sld [smem:[#allocation16_spill]] }
  0x14   : > { %s2515_s24 = scalar_lea.vmem %s416_s29, 16  ;;  %s2522_s28 = scalar_lea.vmem %s416_s29, 32 }
  0x15   : > { %p2506_p8 = pneg %p2727_p7  ;;  %p2516_p9 = scmp.ne.s32.totalorder %s416_s29, %s2515_s24 }
  0x16   : > { %p2523_p12 = scmp.lt.s32.totalorder %s416_s29, %s416_s29  ;;  %p2524_p13 = scmp.lt.s32.totalorder %s2522_s28, %s2515_s24 }
  0x17   : > { %p2518_p10 = pnand %p2516_p9, %p2506_p8 }
  0x18   : > { %p2525_p0 = por %p2524_p13, %p2523_p12 }
  0x19   : > { %s450_s23 = sshll.u32 %s3259_s12, 4  ;;  %p2519_p11 = pneg %p2518_p10  ;;  %s451_s23 = int_to_ptr.vmem [resolvable:$true] %s450_s23 }
  0x1b   : > { %p2526_p1 = pnand %p2525_p0, %p2519_p11 }
  0x1d   : > { %2529 = shalt.err (!%p2526_p1)
}
  0x1e   : > { %s3260_s3 = sld [smem:[#allocation15_spill]]  ;;  %s2530_s17 = scalar_lea.vmem %s451_s23, 64 }
  0x1f   : > { %p2531_p2 = scmp.ne.s32.totalorder %s451_s23, %s2530_s17  ;;  %p2538_p9 = scmp.lt.s32.totalorder %s451_s23, %s451_s23 }
  0x20   : > { %p2539_p10 = scmp.lt.s32.totalorder %s2530_s17, %s2530_s17 }
  0x21   : > { %p2533_p4 = pnand %p2531_p2, %p2506_p8 }
  0x22   : > { %p2540_p5 = por %p2539_p10, %p2538_p9 }
  0x23   : > { %p2534_p6 = pneg %p2533_p4 }
  0x24   : > { %2371 = dma.hbm_to_vmem [thread:$0]  (!%p2727_p7), %s3260_s3, 16, %s416_s29, [#allocation5]  }
  0x25   : > { %p2541_p3 = pnand %p2540_p5, %p2534_p6 }
  0x27   : > { %2544 = shalt.err (!%p2541_p3)
}
  0x28   : > { %s2594_s24 = smov [#allocation7]   ;;  %p3261_p11 = scmp.ne.s32.totalorder %s3255_s26, 0 }
  0x29   : > { %2374 = dma.vmem_to_smem (!%p2727_p7), %s451_s23, 64, %s2594_s24, [#allocation6]  }
  0x2a   : > { %490 = sbr.rel (%p3261_p11) target bundleno = 2074 (0x81a), region = 80  ;;  %p3262_p12 = scmp.ne.s32.totalorder (!%p3261_p11), %s3256_s27, 0 }
  0x2f   : > { %2566 = dma.done.wait (%p3262_p12), [#allocation5], 16  }
  0x30   : > { %2568 = vsyncadd (%p3262_p12), [#allocation5], 4294967280 }
  0x31   : > { %2570 = dma.done.wait (%p3262_p12), [#allocation6], 64  }
  0x32   : > { %2572 = vsyncadd (%p3262_p12), [#allocation6], 4294967232 }
  0x33   : > { %500 = sfence }
  0x34   : > { %s2129_s25 = sshll.u32 %s2575_s18, 2  ;;  %p557_p3 = scmp.lt.s32.totalorder %s2579_s19, 1 }
  0x35   : > { %p559_p5 = scmp.lt.s32.totalorder %s2129_s25, 7  ;;  %p2137_p7 = scmp.ne.s32.totalorder %s2575_s18, 0 }
  0x36   : > { %s3278_s19 = smov (!%p557_p3, %s2579_s19), 1 }
  0x37   : > { %s3280_s25 = smov (!%p559_p5, %s2129_s25), 7  ;;  %s2130_s26 = sshll.u32 %s3278_s19, 3 }
  0x38   : > { %s2205_s29 = sshll.u32 %s3278_s19, 4  ;;  %s562_s30 = sadd.s32 %s2130_s26, %s3280_s25 }
  0x39   : > { %s570_s16 = scalar_lea.vmem %s3225_s1, %s2205_s29  ;;  %s2131_s17 = sshll.u32 %s562_s30, 2 }
  0x3a   : > { %s2136_s24 = sshll.u32 %s562_s30, 3  ;;  %s2768_s12 = scalar_lea.vmem %s3224_s0, %s2131_s17 }
  0x3b   : > { %s2773_s22 = scalar_lea.vmem %s3239_s15, %s2136_s24  ;;  %585 = sbr.rel (%p2137_p7) target bundleno = 586 (0x24a), region = 92 }
  0x40   : > { %v586_v0 = vld [vmem:[%s570_s16] sm:$0xff]  ;;  %v2139_v2 = vld [vmem:[#allocation4] ss:$0 sm:$0xff]  ;;  %vm606_vm0 = vcmask 261120   ;;  %v587_v4 = vld [vmem:[%s570_s16 + $0x8] sm:$0xff]  ;;  %v2595_v22 = vmov 0.0  }
  0x41   : > { %v2138_v1 = vld [vmem:[%s3226_s2] ss:$0 sm:$0xff]  ;;  %v2426_v20 = vld [vmem:[%s3232_s8 + $0x8] sm:$0xff]   ;;  %2256 = vmatprep.subr.bf16.mxu0 %v2595_v22  ;;  %2264 = vmatprep.subr.bf16.mxu1 %v2595_v22  ;;  %vm2596_vm1 = vmmov 0   ;;  %vm728_vm2 = vcmask 257024  }
  0x42   : > { %v595_v3 = vmul.f32 %v2138_v1, %v586_v0  ;;  %v596_v5 = vmul.f32 %v2138_v1, %v587_v4  ;;  %v2427_v21 = vld [vmem:[%s3234_s10 + $0x8] sm:$0xff]   ;;  %2257 = vmatpush3.bf16.msra.mxu0 %v2426_v20  ;;  %v2428_v23 = vld [vmem:[%s3232_s8] sm:$0xff]   ;;  %2260 = vmatprep.mubr.msk.bf16.mxu0 %vm2596_vm1, %v2595_v22 }
  0x43   : > { %2265 = vmatpush3.bf16.msra.mxu1 %v2427_v21  ;;  %v2429_v24 = vld [vmem:[%s3234_s10] sm:$0xff]   ;;  %2258 = vmatprep.subr.bf16.mxu0 %v2595_v22 }
  0x44   : > { %v604_v6 = vadd.f32 %v2139_v2, %v595_v3  ;;  %v605_v7 = vadd.f32 %v2139_v2, %v596_v5  ;;  %2266 = vmatprep.subr.bf16.mxu1 %v2595_v22  ;;  %2268 = vmatprep.mubr.msk.bf16.mxu1 %vm2596_vm1, %v2595_v22  ;;  %v2140_v33 = vld [vmem:[%s3228_s4] ss:$0 sm:$0xff] }
  0x45   : > { %v2141_v37 = vld [vmem:[%s3229_s5] ss:$0 sm:$0xff] }
  0x46   : > { %v607_v8 = vsel %vm606_vm0, %v604_v6, 0.0  ;;  %v610_v9 = vsel %vm606_vm0, %v605_v7, 0.0  ;;  %2259 = vmatpush3.bf16.msra.mxu0 %v2428_v23  ;;  %v2142_v42 = vld [vmem:[%s3233_s9] ss:$0 sm:$0xff] }
  0x47   : > { %608 = vadd.xlane.f32.xlu0 %v607_v8  ;;  %2267 = vmatpush3.bf16.msra.mxu1 %v2429_v24  ;;  %v2148_v43 = vld [vmem:[%s3235_s11] ss:$0 sm:$0xff] }
  0x4b   : > { %611 = vadd.xlane.f32.xlu0 %v610_v9 }
  0xd0   : > { %v609_v10 = vpop.xlane.xlu0 %608 }
  0xd1   : > { %v614_v11 = vmul.f32 0.03125, %v609_v10 }
  0xd3   : > { %v616_v12 = vsub.f32 %v604_v6, %v614_v11 }
  0xd4   : > { %v612_v13 = vpop.xlane.xlu0 %611 }
  0xd5   : > { %v615_v14 = vmul.f32 0.03125, %v612_v13  ;;  %v618_v15 = vmul.f32 %v616_v12, %v616_v12 }
  0xd7   : > { %v617_v16 = vsub.f32 %v605_v7, %v615_v14  ;;  %v620_v17 = vsel %vm606_vm0, %v618_v15, 0.0 }
  0xd8   : > { %621 = vadd.xlane.f32.xlu1 %v620_v17 }
  0xd9   : > { %v619_v18 = vmul.f32 %v617_v16, %v617_v16 }
  0xdb   : > { %v623_v19 = vsel %vm606_vm0, %v619_v18, 0.0 }
  0xdc   : > { %624 = vadd.xlane.f32.xlu1 %v623_v19 }
 0x161   : > { %v622_v25 = vpop.xlane.xlu1 %621 }
 0x162   : > { %v626_v26 = vmul.f32 0.03125, %v622_v25 }
 0x164   : > { %v628_v27 = vadd.f32 1e-05, %v626_v26 }
 0x165   : > { %v625_v28 = vpop.xlane.xlu1 %624 }
 0x166   : > { %2430 = vrsqrt.f32 %v628_v27  ;;  %v627_v29 = vmul.f32 0.03125, %v625_v28 }
 0x168   : > { %v629_v30 = vadd.f32 1e-05, %v627_v29 }
 0x16a   : > { %2432 = vrsqrt.f32 %v629_v30 }
 0x173   : > { %v2431_v31 = vpop.eup %2430 }
 0x174   : > { %v632_v32 = vmul.f32 %v2431_v31, %v616_v12 }
 0x176   : > { %v641_v36 = vmul.f32 %v2140_v33, %v632_v32 }
 0x177   : > { %v2433_v34 = vpop.eup %2432 }
 0x178   : > { %v633_v35 = vmul.f32 %v2433_v34, %v617_v16  ;;  %v650_v39 = vadd.f32 %v2141_v37, %v641_v36 }
 0x17a   : > { %v642_v38 = vmul.f32 %v2140_v33, %v633_v35 }
 0x17c   : > { %v651_v40 = vadd.f32 %v2141_v37, %v642_v38 }
 0x17e   : > { %v652_v41 = vpack.c.bf16 %v651_v40, %v650_v39 }
 0x180   : > { %2261 = vmatmul.mubr.msk.bf16.vlgmr.msra.gmra.mxu0 %vm606_vm0, %v652_v41  ;;  %2269 = vmatmul.mubr.msk.bf16.vlgmr.msra.gmra.mxu1 %vm606_vm0, %v652_v41 }
 0x240   : > { %v713_v44 = vpop.f32.mrf.mxu0  ;;  %v788_v45 = vpop.f32.mrf.mxu1 }
 0x241   : > { %v714_v46 = vadd.f32 %v2142_v42, %v713_v44  ;;  %v789_v47 = vadd.f32 %v2148_v43, %v788_v45 }
 0x242   : > { %v2262_v48 = vpop.f32.mrf.mxu0  ;;  %v2270_v49 = vpop.f32.mrf.mxu1 }
 0x243   : > { %v2206_v50 = vpack.c.bf16 %v714_v46, %v714_v46  ;;  %v2208_v51 = vpack.c.bf16 %v789_v47, %v789_v47 }
 0x244   : > { %v716_v52 = vpop.f32.mrf.mxu0  ;;  %v791_v53 = vpop.f32.mrf.mxu1 }
 0x245   : > { %729 = vst.msk [vmem:[#allocation2] sm:$0xf] %vm728_vm2, %v2206_v50  ;;  %803 = vst.msk [vmem:[#allocation3] sm:$0xf] %vm728_vm2, %v2208_v51  ;;  %v717_v54 = vadd.f32 %v2142_v42, %v716_v52  ;;  %v792_v55 = vadd.f32 %v2148_v43, %v791_v53 }
 0x246   : > { %v2263_v56 = vpop.f32.mrf.mxu0  ;;  %v2271_v57 = vpop.f32.mrf.mxu1 }
 0x247   : > { %v2207_v58 = vpack.c.bf16 %v717_v54, %v717_v54  ;;  %v2209_v59 = vpack.c.bf16 %v792_v55, %v792_v55 }
 0x249   : > { %730 = vst.msk [vmem:[#allocation2 + $0x4] sm:$0xf] %vm728_vm2, %v2207_v58  ;;  %804 = vst.msk [vmem:[#allocation3 + $0x4] sm:$0xf] %vm728_vm2, %v2209_v59 }
 0x24a PF: > { %v2434_v60 = vld [vmem:[%s3230_s6 + $0x8] sm:$0xff]   ;;  %v2435_v61 = vld [vmem:[%s3230_s6] sm:$0xff]   ;;  %vm842_vm3 = vcmask 261120   ;;  %s3248_s29 = smov 120   ;;  %s3246_s30 = smov 112   ;;  %vm907_vm4 = vcmask 64512  }
 0x24b   : > { %2272 = vmatprep.subr.bf16.mxu0 %v2434_v60  ;;  %v2436_v62 = vld [vmem:[%s2768_s12] sm:$0xff]   ;;  %v2437_v0 = vld [vmem:[%s2768_s12 + $0x8] sm:$0xff]   ;;  %s3247_s23 = smov 104   ;;  %s1160_s16 = sld [smem:[#allocation7]]  ;;  %vm1196_vm5 = vcmask 130048   ;;  %vm1458_vm6 = vcmask 1043456  }
 0x24c   : > { %2273 = vmatpush3.bf16.msra.mxu0 %v2434_v60  ;;  %2276 = vmatprep.mubr.msk.bf16.mxu0 %vm842_vm3, %v2436_v62  ;;  %v2154_v7 = vld [vmem:[%s3231_s7] ss:$0 sm:$0xff]  ;;  %s2176_s17 = sld [smem:[#allocation7 + $0x80]] }
 0x24d   : > { %2274 = vmatprep.subr.bf16.mxu0 %v2435_v61  ;;  %s2186_s24 = sld [smem:[#allocation7 + $0x100]] }
 0x24e   : > { %s2194_s27 = sld [smem:[#allocation7 + $0x180]] }
 0x24f   : > { %s2170_s19 = sld [smem:[#allocation7 + $0x1]] }
 0x250   : > { %v2438_v63 = vld [vmem:[#allocation2] sm:$0xff]   ;;  %2275 = vmatpush3.bf16.msra.mxu0 %v2435_v61  ;;  %s2187_s25 = sld [smem:[#allocation7 + $0x101]] }
 0x251   : > { %972 = vrot.lane.b32.xlu0 %v2438_v63, %s3248_s29  ;;  %2352 = vmatprep.subr.msk.bf16.mxu1 %vm907_vm4, %v2438_v63  ;;  %v915_v1 = vsel %vm907_vm4, %v2438_v63, 0  ;;  %s2195_s3 = sld [smem:[#allocation7 + $0x181]]  ;;  %v2863_v31 = vstv %s1160_s16 }
 0x252   : > { %2281 = vmatpush3.bf16.xpose.msra.mxu1 %v915_v1  ;;  %s2177_s18 = sld [smem:[#allocation7 + $0x81]]  ;;  %v1310_v35 = vstv %s2176_s17  ;;  %s3265_s17 = smov 112  }
 0x253   : > { %2277 = vmatmul.mubr.msk.bf16.vlgmr.msra.gmra.mxu0 %vm842_vm3, %v2437_v0  ;;  %s2171_s20 = sld [smem:[#allocation7 + $0x2]]  ;;  %v2865_v32 = vstv %s2186_s24 }
 0x254   : > { %s2178_s21 = sld [smem:[#allocation7 + $0x82]]  ;;  %v2867_v33 = vstv %s2194_s27 }
 0x255   : > { %1036 = vrot.lane.b32.xlu0 %v2438_v63, %s3246_s30  ;;  %s2188_s26 = sld [smem:[#allocation7 + $0x102]]  ;;  %v2855_v28 = vstv %s2170_s19 }
 0x256   : > { %s2196_s12 = sld [smem:[#allocation7 + $0x182]]  ;;  %v2857_v29 = vstv %s2187_s25 }
 0x257   : > { %s2851_s28 = sld [smem:[#allocation7 + $0x83]]  ;;  %v2859_v30 = vstv %s2195_s3 }
 0x258   : > { %v1316_v43 = vstv %s2177_s18 }
 0x259   : > { %1100 = vrot.lane.b32.xlu0 %v2438_v63, %s3247_s23  ;;  %v2881_v45 = vstv %s2171_s20 }
 0x25a   : > { %v1326_v46 = vstv %s2178_s21 }
 0x25b   : > { %v2883_v47 = vstv %s2188_s26 }
 0x25c   : > { %v2885_v48 = vstv %s2196_s12 }
 0x25d   : > { %v1336_v58 = vstv %s2851_s28 }
 0x2c3   : > { %v973_v2 = vpop.permute.xlu0 %972 }
 0x2c4   : > { %v981_v3 = vsel %vm907_vm4, %v973_v2, 0  ;;  %2353 = vmatprep.subr.msk.bf16.mxu0 %vm907_vm4, %v973_v2 }
 0x2c5   : > { %2287 = vmatpush3.bf16.xpose.msra.mxu0 %v981_v3 }
 0x2c7   : > { %v1037_v4 = vpop.permute.xlu0 %1036 }
 0x2c8   : > { %2354 = vmatprep.subr.msk.bf16.mxu1 %vm907_vm4, %v1037_v4  ;;  %v1045_v17 = vsel %vm907_vm4, %v1037_v4, 0 }
 0x2cb   : > { %v1101_v5 = vpop.permute.xlu0 %1100 }
 0x2cc   : > { %2355 = vmatprep.subr.msk.bf16.mxu0 %vm907_vm4, %v1101_v5  ;;  %v1109_v19 = vsel %vm907_vm4, %v1101_v5, 0 }
 0x313   : > { %v2278_v6 = vpop.f32.mrf.mxu0 }
 0x314   : > { %v892_v10 = vadd.f32 %v2278_v6, %v2154_v7 }
 0x315   : > { %v883_v8 = vpop.f32.mrf.mxu0 }
 0x316   : > { %v884_v13 = vadd.f32 %v2154_v7, %v883_v8 }
 0x317   : > { %v2279_v9 = vpop.f32.mrf.mxu0 }
 0x318   : > { %v895_v11 = vadd.f32 %v2279_v9, %v2154_v7 }
 0x319   : > { %v886_v12 = vpop.f32.mrf.mxu0 }
 0x31a   : > { %v899_v14 = vpack.c.bf16 %v895_v11, %v892_v10  ;;  %v887_v15 = vadd.f32 %v2154_v7, %v886_v12 }
 0x31c   : > { %v898_v16 = vpack.c.bf16 %v887_v15, %v884_v13  ;;  %1034 = vrot.lane.b32.xlu0 %v899_v14, %s3246_s30  ;;  %970 = vrot.lane.b32.xlu1 %v899_v14, %s3248_s29 }
 0x31e   : > { %2282 = vmatprep.mubr.msk.bf16.mxu1 %vm907_vm4, %v898_v16 }
 0x31f   : > { %2283 = vmatmul.mubr.msk.bf16.vlgmr.msra.gmra.mxu1 %vm907_vm4, %v899_v14 }
 0x320   : > { %1098 = vrot.lane.b32.xlu0 %v899_v14, %s3247_s23  ;;  %968 = vrot.lane.b32.xlu1 %v898_v16, %s3248_s29  ;;  %s2871_s29 = sld [smem:[#allocation7 + $0x183]] }
 0x321   : > { %2293 = vmatpush3.bf16.xpose.msra.mxu1 %v1045_v17 }
 0x324   : > { %1032 = vrot.lane.b32.xlu1 %v898_v16, %s3246_s30  ;;  %s2861_s30 = sld [smem:[#allocation7 + $0x3]] }
 0x326   : > { %v2925_v10 = vstv %s2871_s29  ;;  %s3263_s29 = smov 120  }
 0x328   : > { %1096 = vrot.lane.b32.xlu1 %v898_v16, %s3247_s23  ;;  %s2869_s23 = sld [smem:[#allocation7 + $0x103]] }
 0x32a   : > { %v2914_v4 = vstv %s2861_s30  ;;  %s3264_s30 = smov 104  }
 0x32e   : > { %v2922_v9 = vstv %s2869_s23 }
 0x38e   : > { %v971_v18 = vpop.permute.xlu1 %970  ;;  %v1035_v21 = vpop.permute.xlu0 %1034 }
 0x392   : > { %v969_v20 = vpop.permute.xlu1 %968  ;;  %v1099_v24 = vpop.permute.xlu0 %1098 }
 0x393   : > { %2288 = vmatprep.mubr.msk.bf16.mxu0 %vm907_vm4, %v969_v20 }
 0x394   : > { %2289 = vmatmul.mubr.msk.bf16.vlgmr.msra.gmra.mxu0 %vm907_vm4, %v971_v18 }
 0x395   : > { %2299 = vmatpush3.bf16.xpose.msra.mxu0 %v1109_v19 }
 0x396   : > { %v1033_v22 = vpop.permute.xlu1 %1032 }
 0x397   : > { %2294 = vmatprep.mubr.msk.bf16.mxu1 %vm907_vm4, %v1033_v22 }
 0x398   : > { %2295 = vmatmul.mubr.msk.bf16.vlgmr.msra.gmra.mxu1 %vm907_vm4, %v1035_v21 }
 0x39a   : > { %v1097_v23 = vpop.permute.xlu1 %1096 }
 0x39b   : > { %2300 = vmatprep.mubr.msk.bf16.mxu0 %vm907_vm4, %v1097_v23 }
 0x39c   : > { %2301 = vmatmul.mubr.msk.bf16.vlgmr.msra.gmra.mxu0 %vm907_vm4, %v1099_v24 }
 0x3df   : > { %v2284_v25 = vpop.f32.mrf.mxu1 }
 0x3e0   : > { %v1164_v39 = vmul.f32 %v2284_v25, %v2863_v31  ;;  %v1573_v40 = vmul.f32 %v2284_v25, %v2865_v32  ;;  %v1778_v41 = vmul.f32 %v2284_v25, %v2867_v33  ;;  %v1313_v49 = vmul.f32 %v2284_v25, %v1310_v35 }
 0x3e1   : > { %v951_v26 = vpop.f32.mrf.mxu1 }
 0x3e2   : > { %v1162_v55 = vmul.f32 %v2863_v31, %v951_v26  ;;  %v1311_v56 = vmul.f32 %v1310_v35, %v951_v26  ;;  %v2897_v57 = vmul.f32 %v2865_v32, %v951_v26  ;;  %v2901_v59 = vmul.f32 %v2867_v33, %v951_v26 }
 0x3e3   : > { %v2853_v27 = vpop.f32.mrf.mxu1 }
 0x3e4   : > { %v1165_v60 = vmul.f32 %v2853_v27, %v2863_v31  ;;  %v1314_v1 = vmul.f32 %v2853_v27, %v1310_v35  ;;  %v2910_v2 = vmul.f32 %v2853_v27, %v2865_v32 }
 0x3e5   : > { %v2879_v42 = vpop.f32.mrf.mxu1 }
 0x3e6   : > { %v1312_v3 = vmul.f32 %v1310_v35, %v2879_v42 }
 0x454   : > { %v2290_v34 = vpop.f32.mrf.mxu0 }
 0x455   : > { %v1170_v36 = vmul.f32 %v2290_v34, %v2855_v28  ;;  %v1579_v37 = vmul.f32 %v2290_v34, %v2857_v29  ;;  %v1784_v38 = vmul.f32 %v2290_v34, %v2859_v30  ;;  %v1319_v61 = vmul.f32 %v2290_v34, %v1316_v43 }
 0x456   : > { %v1017_v44 = vpop.f32.mrf.mxu0 }
 0x457   : > { %v1174_v52 = vadd.f32 %v1170_v36, %v1164_v39  ;;  %v2891_v53 = vadd.f32 %v1784_v38, %v1778_v41  ;;  %v2893_v54 = vadd.f32 %v1579_v37, %v1573_v40  ;;  %v1317_v62 = vmul.f32 %v1316_v43, %v1017_v44 }
 0x458   : > { %v2887_v50 = vpop.f32.mrf.mxu0  ;;  %v2889_v51 = vpop.f32.mrf.mxu1  ;;  %v1168_v11 = vmul.f32 %v2855_v28, %v1017_v44  ;;  %v1577_v12 = vmul.f32 %v2857_v29, %v1017_v44  ;;  %v1782_v13 = vmul.f32 %v2859_v30, %v1017_v44  ;;  %v1323_v20 = vadd.f32 %v1319_v61, %v1313_v49 }
 0x459   : > { %v1320_v5 = vmul.f32 %v2887_v50, %v1316_v43  ;;  %v1180_v15 = vmul.f32 %v2889_v51, %v2881_v45  ;;  %v1321_v19 = vadd.f32 %v1317_v62, %v1311_v56  ;;  %v1171_v21 = vmul.f32 %v2887_v50, %v2855_v28 }
 0x45a   : > { %v2905_v63 = vpop.f32.mrf.mxu0  ;;  %v1081_v0 = vpop.f32.mrf.mxu1  ;;  %v1580_v22 = vmul.f32 %v2887_v50, %v2857_v29  ;;  %v1329_v25 = vmul.f32 %v2889_v51, %v1326_v46  ;;  %v1172_v39 = vadd.f32 %v1168_v11, %v1162_v55 }
 0x45b   : > { %v1327_v6 = vmul.f32 %v1326_v46, %v1081_v0  ;;  %v1318_v14 = vmul.f32 %v1316_v43, %v2905_v63  ;;  %v1178_v23 = vmul.f32 %v2881_v45, %v1081_v0  ;;  %v1324_v36 = vadd.f32 %v1320_v5, %v1314_v1 }
 0x45c   : > { %v2917_v7 = vpop.f32.mrf.mxu1  ;;  %v2919_v8 = vpop.f32.mrf.mxu0  ;;  %v1184_v56 = vadd.f32 %v1180_v15, %v1174_v52  ;;  %v1175_v52 = vadd.f32 %v1171_v21, %v1165_v60  ;;  %v1792_v60 = vmul.f32 %v2885_v48, %v1081_v0 }
 0x45d   : > { %v1330_v16 = vmul.f32 %v2917_v7, %v1326_v46  ;;  %v1331_v34 = vadd.f32 %v1327_v6, %v1321_v19  ;;  %v1322_v38 = vadd.f32 %v1318_v14, %v1312_v3  ;;  %v1181_v41 = vmul.f32 %v2917_v7, %v2881_v45 }
 0x45e   : > { %v2934_v17 = vpop.f32.mrf.mxu1  ;;  %v1145_v18 = vpop.f32.mrf.mxu0  ;;  %v1339_v62 = vmul.f32 %v2919_v8, %v1336_v58  ;;  %v1182_v1 = vadd.f32 %v1178_v23, %v1172_v39  ;;  %v1587_v3 = vmul.f32 %v2883_v47, %v1081_v0  ;;  %v1190_v6 = vmul.f32 %v2919_v8, %v2914_v4 }
 0x45f   : > { %v1328_v24 = vmul.f32 %v1326_v46, %v2934_v17  ;;  %v1337_v35 = vmul.f32 %v1336_v58, %v1145_v18  ;;  %v1188_v40 = vmul.f32 %v2914_v4, %v1145_v18  ;;  %v1334_v49 = vadd.f32 %v1330_v16, %v1324_v36 }
 0x460   : > { %v2303_v26 = vpop.f32.mrf.mxu0  ;;  %v1333_v14 = vadd.f32 %v1329_v25, %v1323_v20  ;;  %v1590_v15 = vmul.f32 %v2917_v7, %v2883_v47  ;;  %v1581_v23 = vadd.f32 %v1577_v12, %v2897_v57  ;;  %v1597_v36 = vmul.f32 %v2922_v9, %v1145_v18 }
 0x461   : > { %v1340_v37 = vmul.f32 %v2303_v26, %v1336_v58  ;;  %v2948_v44 = vadd.f32 %v1337_v35, %v1331_v34  ;;  %v1332_v61 = vadd.f32 %v1328_v24, %v1322_v38  ;;  %v2957_v16 = vadd.f32 %v1188_v40, %v1182_v1 }
 0x462   : > { %v2946_v43 = vpop.f32.mrf.mxu0  ;;  %v1191_v19 = vmul.f32 %v2303_v26, %v2914_v4  ;;  %v1343_v34 = vadd.f32 %v1339_v62, %v1333_v14  ;;  %v1185_v35 = vadd.f32 %v1181_v41, %v1175_v52  ;;  %v1794_v20 = vmul.f32 %v2889_v51, %v2885_v48 }
 0x463   : > { %v1338_v46 = vmul.f32 %v1336_v58, %v2946_v43  ;;  %v1345_v55 = vsel %vm1196_vm5, %v2948_v44, -inf  ;;  %v1344_v5 = vadd.f32 %v1340_v37, %v1334_v49  ;;  %v2961_v58 = vadd.f32 %v1190_v6, %v1184_v56 }
 0x464   : > { %1346 = vmax.xlane.f32.xlu1 %v1345_v55  ;;  %v1591_v25 = vadd.f32 %v1587_v3, %v1581_v23  ;;  %v1785_v37 = vmul.f32 %v2887_v50, %v2859_v30  ;;  %v2973_v57 = vadd.f32 %v1191_v19, %v1185_v35  ;;  %v1584_v12 = vadd.f32 %v1580_v22, %v2910_v2  ;;  %v3005_v55 = vld [vmem:[#allocation3] sm:$0xff]  }
 0x465   : > { %v1342_v11 = vadd.f32 %v1338_v46, %v1332_v61  ;;  %v1354_v21 = vsel %vm1196_vm5, %v1344_v5, -inf  ;;  %v1600_v38 = vmul.f32 %v2303_v26, %v2922_v9  ;;  %v1589_v39 = vmul.f32 %v2889_v51, %v2883_v47  ;;  %2304 = vmatprep.subr.bf16.mxu1 %v3005_v55 }
 0x466   : > { %v2979_v40 = vadd.f32 %v1597_v36, %v1591_v25  ;;  %v1786_v0 = vadd.f32 %v1782_v13, %v2901_v59  ;;  %v1802_v41 = vmul.f32 %v2925_v10, %v1145_v18  ;;  %v1779_v49 = vmul.f32 %v2853_v27, %v2867_v33  ;;  %2305 = vmatpush3.bf16.msra.mxu1 %v3005_v55 }
 0x467   : > { %v1348_v24 = vsel %vm1196_vm5, %v1342_v11, -inf  ;;  %v1795_v50 = vmul.f32 %v2917_v7, %v2885_v48  ;;  %v1351_v56 = vsel %vm1196_vm5, %v1343_v34, -inf  ;;  %v1594_v2 = vadd.f32 %v1590_v15, %v1584_v12 }
 0x468   : > { %1349 = vmax.xlane.f32.xlu0 %v1348_v24  ;;  %1355 = vmax.xlane.f32.xlu1 %v1354_v21  ;;  %v1796_v22 = vadd.f32 %v1792_v60, %v1786_v0  ;;  %v1798_v61 = vadd.f32 %v1794_v20, %v2891_v53  ;;  %v1804_v59 = vmul.f32 %v2919_v8, %v2925_v10 }
 0x469   : > { %v2989_v51 = vadd.f32 %v1600_v38, %v1594_v2  ;;  %v1789_v13 = vadd.f32 %v1785_v37, %v1779_v49  ;;  %v1805_v27 = vmul.f32 %v2303_v26, %v2925_v10  ;;  %v1593_v46 = vadd.f32 %v1589_v39, %v2893_v54 }
 0x46a   : > { %v2993_v18 = vadd.f32 %v1802_v41, %v1796_v22  ;;  %v2997_v7 = vadd.f32 %v1804_v59, %v1798_v61  ;;  %v1599_v1 = vmul.f32 %v2919_v8, %v2922_v9  ;;  %v1169_v60 = vmul.f32 %v2855_v28, %v2905_v63 }
 0x46b   : > { %v1799_v62 = vadd.f32 %v1795_v50, %v1789_v13  ;;  %v1189_v12 = vmul.f32 %v2914_v4, %v2946_v43  ;;  %v1578_v4 = vmul.f32 %v2857_v29, %v2905_v63  ;;  %v1203_v49 = vsel %vm1196_vm5, %v2961_v58, -inf }
 0x46c   : > { %1352 = vmax.xlane.f32.xlu0 %v1351_v56  ;;  %v3003_v53 = vadd.f32 %v1599_v1, %v1593_v46  ;;  %v1572_v50 = vmul.f32 %v2865_v32, %v2879_v42  ;;  %v1588_v56 = vmul.f32 %v2883_v47, %v2934_v17  ;;  %v1206_v2 = vsel %vm1196_vm5, %v2973_v57, -inf }
 0x46d   : > { %v3001_v3 = vadd.f32 %v1805_v27, %v1799_v62  ;;  %v1598_v61 = vmul.f32 %v2922_v9, %v2946_v43  ;;  %v1605_v29 = vsel %vm1196_vm5, %v2979_v40, -inf  ;;  %v1783_v32 = vmul.f32 %v2859_v30, %v2905_v63 }
 0x46e   : > { %v1582_v22 = vadd.f32 %v1578_v4, %v1572_v50  ;;  %v1777_v27 = vmul.f32 %v2867_v33, %v2879_v42  ;;  %v1793_v9 = vmul.f32 %v2885_v48, %v2934_v17  ;;  %v1614_v46 = vsel %vm1196_vm5, %v2989_v51, -inf }
 0x46f   : > { %v1803_v30 = vmul.f32 %v2925_v10, %v2946_v43  ;;  %v1810_v1 = vsel %vm1196_vm5, %v2993_v18, -inf  ;;  %v1819_v48 = vsel %vm1196_vm5, %v3001_v3, -inf  ;;  %v1611_v10 = vsel %vm1196_vm5, %v3003_v53, -inf }
 0x470   : > { %v1592_v59 = vadd.f32 %v1588_v56, %v1582_v22  ;;  %v1787_v62 = vadd.f32 %v1783_v32, %v1777_v27 }
 0x472   : > { %v3054_v13 = vadd.f32 %v1598_v61, %v1592_v59  ;;  %v1797_v63 = vadd.f32 %v1793_v9, %v1787_v62 }
 0x474   : > { %v1608_v47 = vsel %vm1196_vm5, %v3054_v13, -inf }
 0x4ed   : > { %v1347_v6 = vpop.xlane.xlu1 %1346 }
 0x4ee   : > { %v1357_v15 = vsub.f32 %v2948_v44, %v1347_v6  ;;  %v1163_v44 = vmul.f32 %v2863_v31, %v2879_v42  ;;  %v3072_v6 = vadd.f32 %v1803_v30, %v1797_v63  ;;  %v1816_v42 = vsel %vm1196_vm5, %v2997_v7, -inf }
 0x4f0   : > { %v1361_v35 = vmul.f32 1.442695, %v1357_v15  ;;  %v1173_v37 = vadd.f32 %v1169_v60, %v1163_v44  ;;  %v1813_v33 = vsel %vm1196_vm5, %v3072_v6, -inf }
 0x4f1   : > { %v1350_v26 = vpop.xlane.xlu0 %1349  ;;  %v1356_v14 = vpop.xlane.xlu1 %1355 }
 0x4f2   : > { %v1358_v54 = vsub.f32 %v1342_v11, %v1350_v26  ;;  %v1360_v52 = vsub.f32 %v1344_v5, %v1356_v14 }
 0x4f4   : > { %v1363_v19 = vmul.f32 1.442695, %v1358_v54  ;;  %v1367_v23 = vmul.f32 1.442695, %v1360_v52 }
 0x4f5   : > { %v1353_v8 = vpop.xlane.xlu0 %1352 }
 0x4f6   : > { %2440 = vpow2.f32 %v1363_v19  ;;  %v1359_v24 = vsub.f32 %v1343_v34, %v1353_v8  ;;  %v1179_v34 = vmul.f32 %v2881_v45, %v2934_v17  ;;  %v1197_v45 = vsel %vm1196_vm5, %v2957_v16, -inf }
 0x4f7   : > { %2442 = vpow2.f32 %v1367_v23 }
 0x4f8   : > { %v1365_v36 = vmul.f32 1.442695, %v1359_v24  ;;  %v1183_v31 = vadd.f32 %v1179_v34, %v1173_v37 }
 0x4fa   : > { %2444 = vpow2.f32 %v1365_v36  ;;  %v3036_v0 = vadd.f32 %v1189_v12, %v1183_v31 }
 0x4fb   : > { %2446 = vpow2.f32 %v1361_v35 }
 0x4fc   : > { %v1200_v41 = vsel %vm1196_vm5, %v3036_v0, -inf }
 0x503   : > { %v3010_v20 = vpop.eup %2440 }
 0x504   : > { %v1372_v5 = vsel %vm1196_vm5, %v3010_v20, 0.0  ;;  %v3016_v11 = vpop.eup %2442 }
 0x505   : > { %1373 = vadd.xlane.f32.xlu1 %v1372_v5  ;;  %v1378_v25 = vsel %vm1196_vm5, %v3016_v11, 0.0 }
 0x507   : > { %v3022_v21 = vpop.eup %2444 }
 0x508   : > { %v1375_v28 = vsel %vm1196_vm5, %v3022_v21, 0.0  ;;  %v3030_v38 = vpop.eup %2446 }
 0x509   : > { %1379 = vadd.xlane.f32.xlu1 %v1378_v25  ;;  %1376 = vadd.xlane.f32.xlu0 %v1375_v28  ;;  %v1369_v39 = vsel %vm1196_vm5, %v3030_v38, 0.0 }
 0x50d   : > { %1198 = vmax.xlane.f32.xlu1 %v1197_v45  ;;  %1370 = vadd.xlane.f32.xlu0 %v1369_v39 }
 0x511   : > { %1201 = vmax.xlane.f32.xlu1 %v1200_v41 }
 0x515   : > { %1204 = vmax.xlane.f32.xlu1 %v1203_v49 }
 0x519   : > { %1207 = vmax.xlane.f32.xlu1 %v1206_v2 }
 0x51d   : > { %1606 = vmax.xlane.f32.xlu1 %v1605_v29 }
 0x521   : > { %1609 = vmax.xlane.f32.xlu1 %v1608_v47 }
 0x523   : > { %1391 = vrot.lane.b32.xlu0 %v3005_v55, %s3263_s29 }
 0x525   : > { %1615 = vmax.xlane.f32.xlu1 %v1614_v46 }
 0x529   : > { %1811 = vmax.xlane.f32.xlu1 %v1810_v1 }
 0x52d   : > { %1814 = vmax.xlane.f32.xlu1 %v1813_v33 }
 0x531   : > { %1817 = vmax.xlane.f32.xlu1 %v1816_v42 }
 0x535   : > { %1820 = vmax.xlane.f32.xlu1 %v1819_v48 }
 0x542   : > { %1612 = vmax.xlane.f32.xlu0 %v1611_v10 }
 0x58e   : > { %v1374_v17 = vpop.xlane.xlu1 %1373 }
 0x592   : > { %v1380_v43 = vpop.xlane.xlu1 %1379  ;;  %v1377_v26 = vpop.xlane.xlu0 %1376 }
 0x593   : > { %2448 = vrcp.f32 %v1380_v43 }
 0x594   : > { %2450 = vrcp.f32 %v1377_v26 }
 0x595   : > { %2452 = vrcp.f32 %v1374_v17 }
 0x596   : > { %v1199_v14 = vpop.xlane.xlu1 %1198  ;;  %v1371_v54 = vpop.xlane.xlu0 %1370 }
 0x597   : > { %v1209_v52 = vsub.f32 %v2957_v16, %v1199_v14  ;;  %2454 = vrcp.f32 %v1371_v54 }
 0x599   : > { %v1213_v15 = vmul.f32 1.442695, %v1209_v52 }
 0x59a   : > { %v1392_v19 = vpop.permute.xlu0 %1391  ;;  %v1202_v23 = vpop.xlane.xlu1 %1201 }
 0x59b   : > { %2456 = vpow2.f32 %v1213_v15  ;;  %2310 = vmatprep.subr.bf16.mxu0 %v1392_v19  ;;  %v1210_v60 = vsub.f32 %v3036_v0, %v1202_v23 }
 0x59c   : > { %2311 = vmatpush3.bf16.msra.mxu0 %v1392_v19 }
 0x59d   : > { %v1215_v12 = vmul.f32 1.442695, %v1210_v60 }
 0x59e   : > { %v1205_v8 = vpop.xlane.xlu1 %1204 }
 0x59f   : > { %v1211_v24 = vsub.f32 %v2961_v58, %v1205_v8 }
 0x5a0   : > { %v2449_v35 = vpop.eup %2448 }
 0x5a1   : > { %v2451_v36 = vpop.eup %2450  ;;  %v1217_v5 = vmul.f32 1.442695, %v1211_v24  ;;  %v1388_v37 = vmul.f32 %v2449_v35, %v3016_v11 }
 0x5a2   : > { %v2453_v44 = vpop.eup %2452  ;;  %v1208_v34 = vpop.xlane.xlu1 %1207  ;;  %v1387_v28 = vmul.f32 %v2451_v36, %v3022_v21  ;;  %v1451_v36 = vld [vmem:[%s3237_s13 + $0x4] sm:$0xf] }
 0x5a3   : > { %2458 = vpow2.f32 %v1217_v5  ;;  %v1212_v16 = vsub.f32 %v2973_v57, %v1208_v34  ;;  %v1386_v58 = vmul.f32 %v2453_v44, %v3010_v20  ;;  %2356 = vmatprep.subr.msk.bf16.mxu1 %vm1458_vm6, %v1451_v36 }
 0x5a4   : > { %v2455_v25 = vpop.eup %2454  ;;  %v1390_v49 = vpack.c.bf16 %v1388_v37, %v1387_v28 }
 0x5a5   : > { %v1219_v31 = vmul.f32 1.442695, %v1212_v16  ;;  %v1385_v45 = vmul.f32 %v2455_v25, %v3030_v38 }
 0x5a6   : > { %v1607_v39 = vpop.xlane.xlu1 %1606 }
 0x5a7   : > { %2460 = vpow2.f32 %v1219_v31  ;;  %v1617_v0 = vsub.f32 %v2979_v40, %v1607_v39  ;;  %v1389_v41 = vpack.c.bf16 %v1386_v58, %v1385_v45 }
 0x5a8   : > { %v3091_v4 = vpop.eup %2456  ;;  %2462 = vpow2.f32 %v1215_v12 }
 0x5a9   : > { %v1621_v57 = vmul.f32 1.442695, %v1617_v0  ;;  %2312 = vmatprep.mubr.msk.bf16.mxu0 %vm1196_vm5, %v1389_v41  ;;  %v1221_v11 = vsel %vm1196_vm5, %v3091_v4, 0.0  ;;  %v1460_v0 = vsel %vm1458_vm6, %v1451_v36, 0 }
 0x5aa   : > { %2313 = vmatmul.mubr.msk.bf16.vlgmr.msra.gmra.mxu0 %vm1196_vm5, %v1390_v49  ;;  %1222 = vadd.xlane.f32.xlu1 %v1221_v11  ;;  %v1610_v21 = vpop.xlane.xlu1 %1609 }
 0x5ab   : > { %2464 = vpow2.f32 %v1621_v57  ;;  %v1618_v9 = vsub.f32 %v3054_v13, %v1610_v21 }
 0x5ad   : > { %v1623_v63 = vmul.f32 1.442695, %v1618_v9 }
 0x5ae   : > { %v1616_v20 = vpop.xlane.xlu1 %1615 }
 0x5af   : > { %v1620_v38 = vsub.f32 %v2989_v51, %v1616_v20 }
 0x5b0   : > { %v3098_v40 = vpop.eup %2458 }
 0x5b1   : > { %v1627_v50 = vmul.f32 1.442695, %v1620_v38  ;;  %v1227_v56 = vsel %vm1196_vm5, %v3098_v40, 0.0 }
 0x5b2   : > { %1228 = vadd.xlane.f32.xlu0 %v1227_v56  ;;  %v1812_v2 = vpop.xlane.xlu1 %1811 }
 0x5b3   : > { %2466 = vpow2.f32 %v1627_v50  ;;  %v1822_v10 = vsub.f32 %v2993_v18, %v1812_v2 }
 0x5b4   : > { %v3102_v22 = vpop.eup %2460 }
 0x5b5   : > { %v1230_v61 = vsel %vm1196_vm5, %v3102_v22, 0.0  ;;  %v3106_v59 = vpop.eup %2462 }
 0x5b6   : > { %1231 = vadd.xlane.f32.xlu1 %v1230_v61  ;;  %v1815_v29 = vpop.xlane.xlu1 %1814  ;;  %v1224_v51 = vsel %vm1196_vm5, %v3106_v59, 0.0 }
 0x5b7   : > { %v1823_v1 = vsub.f32 %v3072_v6, %v1815_v29 }
 0x5b8   : > { %v3108_v32 = vpop.eup %2464 }
 0x5b9   : > { %v1629_v47 = vsel %vm1196_vm5, %v3108_v32, 0.0  ;;  %v1828_v48 = vmul.f32 1.442695, %v1823_v1 }
 0x5ba   : > { %1225 = vadd.xlane.f32.xlu1 %v1224_v51  ;;  %1630 = vadd.xlane.f32.xlu0 %v1629_v47  ;;  %v1818_v27 = vpop.xlane.xlu1 %1817 }
 0x5bb   : > { %v1824_v43 = vsub.f32 %v2997_v7, %v1818_v27 }
 0x5bd   : > { %v1830_v52 = vmul.f32 1.442695, %v1824_v43 }
 0x5be   : > { %v1821_v46 = vpop.xlane.xlu1 %1820 }
 0x5bf   : > { %v1825_v62 = vsub.f32 %v3001_v3, %v1821_v46  ;;  %v1826_v3 = vmul.f32 1.442695, %v1822_v10 }
 0x5c0   : > { %v3116_v30 = vpop.eup %2466 }
 0x5c1   : > { %v1832_v33 = vmul.f32 1.442695, %v1825_v62  ;;  %v1638_v42 = vsel %vm1196_vm5, %v3116_v30, 0.0 }
 0x5c2   : > { %1639 = vadd.xlane.f32.xlu1 %v1638_v42 }
 0x5c3   : > { %2468 = vpow2.f32 %v1832_v33 }
 0x5c4   : > { %2470 = vpow2.f32 %v1623_v63 }
 0x5c5   : > { %2472 = vpow2.f32 %v1828_v48 }
 0x5cb   : > { %v1613_v13 = vpop.xlane.xlu0 %1612 }
 0x5cc   : > { %v1619_v17 = vsub.f32 %v3003_v53, %v1613_v13 }
 0x5ce   : > { %v1625_v26 = vmul.f32 1.442695, %v1619_v17 }
 0x5d0   : > { %v3124_v14 = vpop.eup %2468  ;;  %2474 = vpow2.f32 %v1625_v26 }
 0x5d1   : > { %v1843_v6 = vsel %vm1196_vm5, %v3124_v14, 0.0  ;;  %v3128_v54 = vpop.eup %2470  ;;  %2476 = vpow2.f32 %v1826_v3 }
 0x5d2   : > { %1844 = vadd.xlane.f32.xlu1 %v1843_v6  ;;  %v1632_v18 = vsel %vm1196_vm5, %v3128_v54, 0.0  ;;  %v3132_v15 = vpop.eup %2472  ;;  %2478 = vpow2.f32 %v1830_v52 }
 0x5d3   : > { %v1837_v7 = vsel %vm1196_vm5, %v3132_v15, 0.0 }
 0x5d6   : > { %1633 = vadd.xlane.f32.xlu1 %v1632_v18  ;;  %v1711_v18 = vld [vmem:[%s3237_s13 + $0x8] sm:$0xf] }
 0x5da   : > { %1838 = vadd.xlane.f32.xlu1 %v1837_v7 }
 0x5dd   : > { %v3136_v53 = vpop.eup %2474 }
 0x5de   : > { %v1635_v19 = vsel %vm1196_vm5, %v3136_v53, 0.0  ;;  %v3140_v23 = vpop.eup %2476 }
 0x5df   : > { %1636 = vadd.xlane.f32.xlu0 %v1635_v19  ;;  %v1834_v8 = vsel %vm1196_vm5, %v3140_v23, 0.0  ;;  %v3144_v24 = vpop.eup %2478 }
 0x5e0   : > { %v1840_v35 = vsel %vm1196_vm5, %v3144_v24, 0.0 }
 0x5e3   : > { %1835 = vadd.xlane.f32.xlu0 %v1834_v8  ;;  %v1719_v8 = vsel %vm1458_vm6, %v1711_v18, 0 }
 0x5e7   : > { %1841 = vadd.xlane.f32.xlu0 %v1840_v35 }
 0x5eb   : > { %1856 = vrot.lane.b32.xlu1 %v3005_v55, %s3264_s30 }
 0x5fd   : > { %1651 = vrot.lane.b32.xlu0 %v3005_v55, %s3265_s17 }
 0x633   : > { %v1223_v60 = vpop.xlane.xlu1 %1222 }
 0x63b   : > { %v1229_v44 = vpop.xlane.xlu0 %1228 }
 0x63f   : > { %v1232_v5 = vpop.xlane.xlu1 %1231 }
 0x640   : > { %2480 = vrcp.f32 %v1232_v5 }
 0x641   : > { %2482 = vrcp.f32 %v1223_v60 }
 0x642   : > { %2484 = vrcp.f32 %v1229_v44 }
 0x643   : > { %v1226_v34 = vpop.xlane.xlu1 %1225  ;;  %v1631_v57 = vpop.xlane.xlu0 %1630 }
 0x644   : > { %2486 = vrcp.f32 %v1226_v34 }
 0x64b   : > { %v1640_v41 = vpop.xlane.xlu1 %1639 }
 0x64d   : > { %v2481_v16 = vpop.eup %2480 }
 0x64e   : > { %v2483_v25 = vpop.eup %2482  ;;  %v1240_v12 = vmul.f32 %v2481_v16, %v3102_v22 }
 0x64f   : > { %v2485_v28 = vpop.eup %2484  ;;  %v1237_v31 = vmul.f32 %v2483_v25, %v3091_v4 }
 0x650   : > { %v1239_v55 = vmul.f32 %v2485_v28, %v3098_v40 }
 0x651   : > { %v2487_v37 = vpop.eup %2486 }
 0x652   : > { %v1238_v45 = vmul.f32 %v2487_v37, %v3106_v59  ;;  %v1242_v39 = vpack.c.bf16 %v1240_v12, %v1239_v55 }
 0x654   : > { %v1241_v58 = vpack.c.bf16 %v1238_v45, %v1237_v31 }
 0x656   : > { %2306 = vmatprep.mubr.msk.bf16.mxu1 %vm1196_vm5, %v1241_v58 }
 0x657   : > { %2307 = vmatmul.mubr.msk.bf16.vlgmr.msra.gmra.mxu1 %vm1196_vm5, %v1242_v39 }
 0x658   : > { %2317 = vmatpush3.bf16.msra.mxu1 %v1460_v0 }
 0x65b   : > { %v1845_v49 = vpop.xlane.xlu1 %1844 }
 0x65f   : > { %v1634_v11 = vpop.xlane.xlu1 %1633 }
 0x660   : > { %2488 = vrcp.f32 %v1634_v11 }
 0x661   : > { %2490 = vrcp.f32 %v1631_v57 }
 0x662   : > { %2492 = vrcp.f32 %v1640_v41 }
 0x663   : > { %v1839_v4 = vpop.xlane.xlu1 %1838 }
 0x667   : > { %v1857_v62 = vpop.permute.xlu1 %1856 }
 0x668   : > { %v1637_v21 = vpop.xlane.xlu0 %1636 }
 0x669   : > { %2494 = vrcp.f32 %v1637_v21 }
 0x66a   : > { %v2314_v20 = vpop.f32.mrf.mxu0  ;;  %2496 = vrcp.f32 %v1839_v4 }
 0x66c   : > { %v1434_v38 = vpop.f32.mrf.mxu0  ;;  %v1836_v40 = vpop.xlane.xlu0 %1835 }
 0x66d   : > { %v2489_v50 = vpop.eup %2488  ;;  %2498 = vrcp.f32 %v1836_v40 }
 0x66e   : > { %v2491_v56 = vpop.eup %2490  ;;  %v2315_v2 = vpop.f32.mrf.mxu0  ;;  %2500 = vrcp.f32 %v1845_v49  ;;  %v1646_v22 = vmul.f32 %v2489_v50, %v3128_v54  ;;  %v1308_v54 = vld [vmem:[%s3237_s13] sm:$0xf] }
 0x66f   : > { %v1645_v51 = vmul.f32 %v2491_v56, %v3108_v32  ;;  %v1450_v47 = vpack.c.bf16 %v2315_v2, %v2314_v20  ;;  %v2493_v9 = vpop.eup %2492  ;;  %2357 = vmatprep.subr.msk.bf16.mxu0 %vm1458_vm6, %v1308_v54  ;;  %v1518_v52 = vsel %vm1458_vm6, %v1308_v54, 0 }
 0x670   : > { %v1437_v61 = vpop.f32.mrf.mxu0  ;;  %v1842_v59 = vpop.xlane.xlu0 %1841  ;;  %v1648_v33 = vmul.f32 %v2493_v9, %v3116_v30  ;;  %2323 = vmatpush3.bf16.msra.mxu0 %v1518_v52 }
 0x671   : > { %v1449_v29 = vpack.c.bf16 %v1437_v61, %v1434_v38  ;;  %2502 = vrcp.f32 %v1842_v59  ;;  %v1649_v27 = vpack.c.bf16 %v1646_v22, %v1645_v51  ;;  %2358 = vmatprep.subr.msk.bf16.mxu0 %vm1458_vm6, %v1711_v18  ;;  %v2202_v22 = vld [vmem:[%s3238_s14] ss:$0 sm:$0xff] }
 0x673   : > { %2318 = vmatprep.mubr.msk.bf16.mxu1 %vm907_vm4, %v1449_v29 }
 0x674   : > { %v1652_v46 = vpop.permute.xlu0 %1651  ;;  %2319 = vmatmul.mubr.msk.bf16.vlgmr.msra.gmra.mxu1 %vm907_vm4, %v1450_v47 }
 0x675   : > { %2328 = vmatprep.subr.bf16.mxu1 %v1652_v46  ;;  %2330 = vmatprep.mubr.msk.bf16.mxu1 %vm1196_vm5, %v1649_v27 }
 0x676   : > { %v2495_v63 = vpop.eup %2494  ;;  %2329 = vmatpush3.bf16.msra.mxu1 %v1652_v46 }
 0x677   : > { %v1647_v1 = vmul.f32 %v2495_v63, %v3136_v53  ;;  %2340 = vmatprep.subr.bf16.mxu1 %v1857_v62  ;;  %v2497_v32 = vpop.eup %2496 }
 0x678   : > { %v1851_v13 = vmul.f32 %v2497_v32, %v3132_v15 }
 0x679   : > { %v1650_v42 = vpack.c.bf16 %v1648_v33, %v1647_v1 }
 0x67a   : > { %v2499_v48 = vpop.eup %2498 }
 0x67b   : > { %v1850_v10 = vmul.f32 %v2499_v48, %v3140_v23  ;;  %v2501_v17 = vpop.eup %2500 }
 0x67c   : > { %2331 = vmatmul.mubr.msk.bf16.vlgmr.msra.gmra.mxu1 %vm1196_vm5, %v1650_v42  ;;  %v1853_v30 = vmul.f32 %v2501_v17, %v3124_v14 }
 0x67d   : > { %2341 = vmatpush3.bf16.msra.mxu1 %v1857_v62  ;;  %v1854_v3 = vpack.c.bf16 %v1851_v13, %v1850_v10 }
 0x67e   : > { %v2503_v43 = vpop.eup %2502 }
 0x67f   : > { %2342 = vmatprep.mubr.msk.bf16.mxu1 %vm1196_vm5, %v1854_v3  ;;  %v1852_v26 = vmul.f32 %v2503_v43, %v3144_v24  ;;  %v1916_v24 = vld [vmem:[%s3237_s13 + $0xc] sm:$0xf] }
 0x680   : > { %v1924_v31 = vsel %vm1458_vm6, %v1916_v24, 0 }
 0x681   : > { %v1855_v6 = vpack.c.bf16 %v1853_v30, %v1852_v26 }
 0x684   : > { %2343 = vmatmul.mubr.msk.bf16.vlgmr.msra.gmra.mxu1 %vm1196_vm5, %v1855_v6 }
 0x717   : > { %v2308_v15 = vpop.f32.mrf.mxu1 }
 0x719   : > { %v1291_v14 = vpop.f32.mrf.mxu1 }
 0x71b   : > { %v2309_v7 = vpop.f32.mrf.mxu1 }
 0x71c   : > { %v1307_v23 = vpack.c.bf16 %v2309_v7, %v2308_v15 }
 0x71d   : > { %v1294_v53 = vpop.f32.mrf.mxu1 }
 0x71e   : > { %v1306_v19 = vpack.c.bf16 %v1294_v53, %v1291_v14 }
 0x720   : > { %2324 = vmatprep.mubr.msk.bf16.mxu0 %vm907_vm4, %v1306_v19 }
 0x721   : > { %2325 = vmatmul.mubr.msk.bf16.vlgmr.msra.gmra.mxu0 %vm907_vm4, %v1307_v23 }
 0x722   : > { %2335 = vmatpush3.bf16.msra.mxu0 %v1719_v8 }
 0x723   : > { %2359 = vmatprep.subr.msk.bf16.mxu0 %vm1458_vm6, %v1916_v24 }
 0x734   : > { %v2320_v35 = vpop.f32.mrf.mxu1 }
 0x736   : > { %v1496_v36 = vpop.f32.mrf.mxu1 }
 0x738   : > { %v2321_v60 = vpop.f32.mrf.mxu1 }
 0x73a   : > { %v1499_v5 = vpop.f32.mrf.mxu1 }
 0x73c   : > { %v2332_v44 = vpop.f32.mrf.mxu1 }
 0x73e   : > { %v1694_v34 = vpop.f32.mrf.mxu1 }
 0x740   : > { %v2333_v16 = vpop.f32.mrf.mxu1 }
 0x741   : > { %v1710_v37 = vpack.c.bf16 %v2333_v16, %v2332_v44 }
 0x742   : > { %v1697_v25 = vpop.f32.mrf.mxu1 }
 0x743   : > { %v1709_v28 = vpack.c.bf16 %v1697_v25, %v1694_v34 }
 0x744   : > { %v2344_v12 = vpop.f32.mrf.mxu1 }
 0x745   : > { %2336 = vmatprep.mubr.msk.bf16.mxu0 %vm907_vm4, %v1709_v28 }
 0x746   : > { %2337 = vmatmul.mubr.msk.bf16.vlgmr.msra.gmra.mxu0 %vm907_vm4, %v1710_v37  ;;  %v1899_v45 = vpop.f32.mrf.mxu1 }
 0x747   : > { %2347 = vmatpush3.bf16.msra.mxu0 %v1924_v31 }
 0x748   : > { %v2345_v55 = vpop.f32.mrf.mxu1 }
 0x749   : > { %v1915_v0 = vpack.c.bf16 %v2345_v55, %v2344_v12 }
 0x74a   : > { %v1902_v58 = vpop.f32.mrf.mxu1 }
 0x74b   : > { %v1914_v39 = vpack.c.bf16 %v1902_v58, %v1899_v45 }
 0x74d   : > { %2348 = vmatprep.mubr.msk.bf16.mxu0 %vm907_vm4, %v1914_v39 }
 0x74e   : > { %2349 = vmatmul.mubr.msk.bf16.vlgmr.msra.gmra.mxu0 %vm907_vm4, %v1915_v0 }
 0x7e1   : > { %v2326_v41 = vpop.f32.mrf.mxu0 }
 0x7e2   : > { %v1563_v38 = vadd.f32 %v2326_v41, %v2320_v35 }
 0x7e3   : > { %v1554_v49 = vpop.f32.mrf.mxu0 }
 0x7e4   : > { %v1555_v50 = vadd.f32 %v1554_v49, %v1496_v36 }
 0x7e5   : > { %v2327_v57 = vpop.f32.mrf.mxu0 }
 0x7e6   : > { %v1566_v61 = vadd.f32 %v2327_v57, %v2321_v60 }
 0x7e7   : > { %v1557_v11 = vpop.f32.mrf.mxu0 }
 0x7e8   : > { %v1558_v47 = vadd.f32 %v1557_v11, %v1499_v5 }
 0x806   : > { %v2338_v4 = vpop.f32.mrf.mxu0 }
 0x807   : > { %v1772_v56 = vadd.f32 %v2338_v4, %v1563_v38 }
 0x808   : > { %v1755_v21 = vpop.f32.mrf.mxu0 }
 0x809   : > { %v1770_v59 = vadd.f32 %v1755_v21, %v1555_v50 }
 0x80a   : > { %v2339_v20 = vpop.f32.mrf.mxu0 }
 0x80b   : > { %v1773_v27 = vadd.f32 %v2339_v20, %v1566_v61 }
 0x80c   : > { %v1758_v40 = vpop.f32.mrf.mxu0 }
 0x80d   : > { %v1771_v63 = vadd.f32 %v1758_v40, %v1558_v47 }
 0x80e   : > { %v2350_v2 = vpop.f32.mrf.mxu0 }
 0x80f   : > { %v1977_v29 = vadd.f32 %v2350_v2, %v1772_v56 }
 0x810   : > { %v1960_v51 = vpop.f32.mrf.mxu0 }
 0x811   : > { %v1988_v9 = vadd.f32 %v2202_v22, %v1977_v29  ;;  %v1975_v46 = vadd.f32 %v1960_v51, %v1770_v59 }
 0x812   : > { %v2351_v62 = vpop.f32.mrf.mxu0 }
 0x813   : > { %1992 = vst.msk [vmem:[%s2773_s22 + $0x10] sm:$0xff] %vm842_vm3, %v1988_v9  ;;  %v1986_v1 = vadd.f32 %v2202_v22, %v1975_v46  ;;  %v1978_v33 = vadd.f32 %v2351_v62, %v1773_v27 }
 0x814   : > { %v1963_v32 = vpop.f32.mrf.mxu0 }
 0x815   : > { %1990 = vst.msk [vmem:[%s2773_s22] sm:$0xff] %vm842_vm3, %v1986_v1  ;;  %v1989_v42 = vadd.f32 %v2202_v22, %v1978_v33  ;;  %v1976_v48 = vadd.f32 %v1963_v32, %v1771_v63 }
 0x817   : > { %1993 = vst.msk [vmem:[%s2773_s22 + $0x18] sm:$0xff] %vm842_vm3, %v1989_v42  ;;  %v1987_v10 = vadd.f32 %v2202_v22, %v1976_v48 }
 0x819   : > { %1991 = vst.msk [vmem:[%s2773_s22 + $0x8] sm:$0xff] %vm842_vm3, %v1987_v10 }
 0x81a PF: > { %s3266_s26 = sld [smem:[#allocation12_spill]] }
 0x81b   : > { %s3267_s18 = sld [smem:[#allocation10_spill]] }
 0x81c   : > { %s3268_s19 = sld [smem:[#allocation11_spill]] }
 0x81d   : > { %s3269_s20 = sld [smem:[#allocation13_spill]] }
 0x81e   : > { %s3270_s21 = sld [smem:[#allocation14_spill]] }
 0x820   : > { %s27_s22 = sadd.s32 1, %s3266_s26  }
 0x821   : > { %p24_p8 = scmp.ge.s32.totalorder %s27_s22, 6  }
 0x823   :  { %26 = sbr.rel (!%p24_p8) target bundleno = 7 (0x7), region = 127 }
 0x828   :  { %2024 = vsyncpa [#allocation5], 1 }
 0x829   :  { %2026 = vsyncpa [#allocation5 + $0x1], 1 }
 0x82a   :  { %2027 = vsyncpa [#allocation6], 1 }
 0x82b   :  { %2029 = vsyncpa [#allocation6 + $0x1], 1 }

</bundles_post_ra>
